<compile_context>
chip_gen: v6e
topology: v6e:2x2x1
jax: 0.10.0
libtpu: 0.0.40
codegen_flags: <defaults>
</compile_context>

<pallas_src>
import numpy as np
import jax
import jax.numpy as jnp
from jax.experimental import pallas as pl
from jax.experimental.pallas import tpu as pltpu

LN_EPS = 1e-3   # ChLayerNorm eps in the DreamerV3 torch code.


def _default_vmem_limit():
    # Review: size the scoped-VMEM budget off the real chip (v7x: 64 MiB physical)
    # instead of a hard-coded constant; fall back to a safe 32 MiB.
    try:
        info = pltpu.get_tpu_info()
        cap = getattr(info, "vmem_capacity_bytes", None) or getattr(info, "vmem_size_bytes", None)
        if cap:
            return int(min(int(cap) // 2, 64 << 20))
    except Exception:
        pass
    return 32 << 20


VMEM_LIMIT = _default_vmem_limit()

# (dh, dw) input-shift order, shared by the weight stacking and the kernel rolls.
SHIFTS = ((-1, -1), (-1, 0), (-1, 1),
          (0, -1),  (0, 0),  (0, 1),
          (1, -1),  (1, 0),  (1, 1))
# dh -> ((output row parity ph, kernel tap kh), ...) for ConvTranspose2d(4,2,1):
#   oh = 2*ih - 1 + kh,  ih = i + dh,  oh = 2*i + ph   =>   kh = ph + 1 - 2*dh.
ROW_TERMS = {-1: ((0, 3),), 0: ((0, 1), (1, 2)), 1: ((1, 0),)}


def _round_up(x, m):
    return (x + m - 1) // m * m


def _pick_tile(n, prefs):
    for t in prefs:
        if n % t == 0:
            return t
    return n


# ----------------------------- linear layer ----------------------------------
def _linear_kernel(x_ref, w_ref, b_ref, o_ref, acc_ref):
    k = pl.program_id(2)

    @pl.when(k == 0)
    def _():
        acc_ref[...] = jnp.zeros_like(acc_ref)

    # x/w are already bf16 (cast once in the wrapper / stored bf16 at init).
    acc_ref[...] += jnp.dot(x_ref[...], w_ref[...],
                            preferred_element_type=jnp.float32)

    @pl.when(k == pl.num_programs(2) - 1)
    def _():
        o_ref[...] = (acc_ref[...] + b_ref[...]).astype(o_ref.dtype)


def linear_pallas(x, w_bf, b):
    Bx, K = x.shape
    E = w_bf.shape[1]
    tn = _pick_tile(E, (256, 128))                 # 256-wide output on v6e/v7x
    tk = _pick_tile(K, (512, 256, 128))
    tm = Bx if Bx <= 1024 else _pick_tile(Bx, (512, 256, 128, 64, 32, 16))
    grid = (Bx // tm, E // tn, K // tk)
    return pl.pallas_call(
        _linear_kernel,
        out_shape=jax.ShapeDtypeStruct((Bx, E), jnp.bfloat16),
        grid=grid,
        in_specs=[pl.BlockSpec((tm, tk), lambda i, j, k: (i, k)),
                  pl.BlockSpec((tk, tn), lambda i, j, k: (k, j)),
                  pl.BlockSpec((1, tn), lambda i, j, k: (0, j))],
        out_specs=pl.BlockSpec((tm, tn), lambda i, j, k: (i, j)),
        scratch_shapes=[pltpu.VMEM((tm, tn), jnp.float32)],
        compiler_params=pltpu.CompilerParams(
            dimension_semantics=("parallel", "parallel", "arbitrary"),
            vmem_limit_bytes=VMEM_LIMIT),
    )(x.astype(jnp.bfloat16), w_bf, b)


# ------------------------ transposed-conv layer -------------------------------
def make_deconv_kernel(rows, cin, cout, shift_offsets, use_bias, use_norm, use_act):
    P = 4 * cout

    def kernel(*refs):
        it = iter(refs)
        x_ref = next(it)
        w_ref = next(it)
        b_ref = next(it) if use_bias else None
        if use_norm:
            s_ref = next(it)   # (P, 8) group-mean matrix
            e_ref = next(it)   # (8, P) 0/1 broadcast matrix
            g_ref = next(it)   # (1, P) gamma (phase-tiled)
            t_ref = next(it)   # (1, P) beta  (phase-tiled)
        o_ref = next(it)

        x_bf = x_ref[...]                        # (rows, cin) bf16 straight from HBM
        x32 = x_bf.astype(jnp.float32)           # single upcast; rolls need 32-bit rotate
        acc = jnp.zeros((rows, P), jnp.float32)
        # TODO(synk): a single (rows, 9*cin) fat-K matmul (review #2) needs a
        # lane-unaligned concatenate (cin << 128); keep the proven 9-matmul form
        # while these layers remain memory-bound.
        for s, d in enumerate(shift_offsets):    # 9 static shifts
            if d == 0:
                xs = x_bf
            else:
                # Sublane rotate (XLU).  Wrap-around rows only land in halo /
                # alignment-padding rows that _from_phase_packed crops; do NOT
                # change that crop or the zero padding without revisiting this.
                xs = pltpu.roll(x32, shift=(-d) % rows, axis=0).astype(jnp.bfloat16)
            acc = acc + jnp.dot(xs, w_ref[s * cin:(s + 1) * cin, :],
                                preferred_element_type=jnp.float32)
        if use_bias:
            acc = acc + b_ref[...]
        if use_norm:
            # Per-pixel LayerNorm over each Cout-wide phase group, reduce+broadcast
            # form (review #3): group means via a (P,8) matmul, broadcast back via
            # an (8,P) 0/1 matmul.  Kept in f32 so LN precision does not lean on eps.
            mu = jnp.dot(jnp.dot(acc, s_ref[...], preferred_element_type=jnp.float32),
                         e_ref[...], preferred_element_type=jnp.float32)
            cen = acc - mu
            var = jnp.dot(jnp.dot(cen * cen, s_ref[...], preferred_element_type=jnp.float32),
                          e_ref[...], preferred_element_type=jnp.float32)
            acc = cen * jax.lax.rsqrt(var + LN_EPS) * g_ref[...] + t_ref[...]
        if use_act:
            # ELU(alpha=1); clamp before exp so the discarded branch can't overflow.
            acc = jnp.where(acc > 0.0, acc, jnp.exp(jnp.minimum(acc, 0.0)) - 1.0)
        o_ref[...] = acc.astype(o_ref.dtype)

    return kernel


def _to_flat_frame(x):
    """NHWC (B,H,W,C) -> bf16, zero 1-px halo, flattened to (B*rpi, C).

    rpi = (H+2)*(W+2) rounded up to 16 (bf16 sublane-tile alignment).  Interior
    output rows never read past their own image's (H+2)*(W+2) rows, so the roll
    wrap-around in the kernel only touches halo / padding rows that are cropped
    by _from_phase_packed."""
    B, H, W, C = x.shape
    Hp, Wp = H + 2, W + 2
    rpi = _round_up(Hp * Wp, 16)
    xp = jnp.pad(x.astype(jnp.bfloat16), ((0, 0), (1, 1), (1, 1), (0, 0)))
    xp = xp.reshape(B, Hp * Wp, C)
    if rpi != Hp * Wp:
        xp = jnp.pad(xp, ((0, 0), (0, rpi - Hp * Wp), (0, 0)))
    return xp.reshape(B * rpi, C), rpi


def _from_phase_packed(y, B, H, W, cout, rpi):
    """(B*rpi, 4*Cout) phase-packed padded-frame rows -> NHWC (B, 2H, 2W, Cout)."""
    Hp, Wp = H + 2, W + 2
    y = y.reshape(B, rpi, 4, cout)[:, :Hp * Wp]
    y = y.reshape(B, Hp, Wp, 2, 2, cout)[:, 1:H + 1, 1:W + 1]   # (B,H,W,ph,pw,C)
    y = jnp.transpose(y, (0, 1, 3, 2, 4, 5))                    # (B,H,ph,W,pw,C)
    return y.reshape(B, 2 * H, 2 * W, cout)


def _batch_block(B, rpi, cin, pout):
    # Rough per-image VMEM working set inside the kernel: bf16 input block, its
    # f32 upcast plus a couple of live rolled copies, the f32 accumulator and the
    # (bf16) output block.  Target a few MiB per grid step (review #4: ~1 MiB
    # tiles leave 15-40% HBM BW on the table) while staying well inside the
    # scoped-VMEM budget (double-buffered HBM I/O is bf16 and small).
    bytes_per_img = rpi * (cin * (2 + 4 * 3) + pout * (4 + 2))
    bb = max(1, (6 << 20) // max(1, bytes_per_img))
    if B >= 2:
        bb = min(bb, B // 2)     # >=2 grid steps: pipelining + v7x megacore sharding
    bb = max(1, min(bb, B))
    while B % bb:                # block must divide the batch
        bb -= 1
    return bb


def deconv_layer_pallas(x_nhwc, lyr, final=False):
    B, H, W, cin = x_nhwc.shape
    cout = lyr["cout"]
    P = 4 * cout
    xf, rpi = _to_flat_frame(x_nhwc)
    Wp = W + 2
    shift_offsets = tuple(dh * Wp + dw for dh, dw in SHIFTS)
    bb = _batch_block(B, rpi, cin, P)
    rows = bb * rpi
    out_dtype = jnp.float32 if final else jnp.bfloat16   # review #7
    kernel = make_deconv_kernel(rows, cin, cout, shift_offsets,
                                lyr["use_bias"], lyr["use_norm"], lyr["use_act"])

    # Only ship the operands this layer actually uses (review #10).
    operands = [xf, lyr["w_stack"]]
    in_specs = [pl.BlockSpec((rows, cin), lambda i: (i, 0)),
                pl.BlockSpec((9 * cin, P), lambda i: (0, 0))]
    if lyr["use_bias"]:
        operands.append(lyr["b4"])
        in_specs.append(pl.BlockSpec((1, P), lambda i: (0, 0)))
    if lyr["use_norm"]:
        operands += [lyr["ln_sum"], lyr["ln_bcast"], lyr["g4"], lyr["bt4"]]
        in_specs += [pl.BlockSpec((P, 8), lambda i: (0, 0)),
                     pl.BlockSpec((8, P), lambda i: (0, 0)),
                     pl.BlockSpec((1, P), lambda i: (0, 0)),
                     pl.BlockSpec((1, P), lambda i: (0, 0))]
    # TODO(synk): mark the constant operands pipeline_mode=pl.Buffered(1) once
    # single-buffered pipelining is verified on the target jax version.

    y = pl.pallas_call(
        kernel,
        out_shape=jax.ShapeDtypeStruct((B * rpi, P), out_dtype),
        grid=(B // bb,),
        in_specs=in_specs,
        out_specs=pl.BlockSpec((rows, P), lambda i: (i, 0)),
        compiler_params=pltpu.CompilerParams(
            dimension_semantics=("parallel",),
            vmem_limit_bytes=VMEM_LIMIT),
    )(*operands)
    # TODO(synk): the phase de-interleave + next-layer halo re-pad below is still
    # XLA glue (review #8); folding it into the Pallas pipeline would save ~2
    # full-activation HBM passes per layer.
    return _from_phase_packed(y, B, H, W, cout, rpi)


# ------------------------- parameters (deterministic) -------------------------
def _build_weight_stack(w_pt):
    """PyTorch ConvTranspose2d weight (Cin,Cout,4,4) -> (9*Cin, 4*Cout) bf16 stack.

    Row block s holds the weights for input shift SHIFTS[s]; the 4*Cout lanes are
    the four output phases p = 2*ph + pw (zero where that shift feeds no tap)."""
    cin, cout = w_pt.shape[:2]
    blocks = []
    for dh, dw in SHIFTS:
        blk = jnp.zeros((cin, 4 * cout), jnp.float32)
        for ph, kh in ROW_TERMS[dh]:
            for pw, kw in ROW_TERMS[dw]:
                p = 2 * ph + pw
                blk = blk.at[:, p * cout:(p + 1) * cout].set(w_pt[:, :, kh, kw])
        blocks.append(blk)
    return jnp.concatenate(blocks, axis=0).astype(jnp.bfloat16)


def init_decoder_params(key, feat_size, shape=(3, 16, 16), depth=8, minres=4):
    layer_num = int(np.log2(shape[1]) - np.log2(minres))
    embed_size = minres * minres * depth * 2 ** (layer_num - 1)
    keys = jax.random.split(key, 2 + 2 * layer_num)
    lin_w = jax.random.normal(keys[0], (feat_size, embed_size),
                              jnp.float32) / np.sqrt(feat_size)
    params = {
        "lin_w": lin_w,                               # f32 ground truth (reference)
        "lin_w_bf": lin_w.astype(jnp.bfloat16),       # kernel operand (review #1)
        "lin_b": jax.random.normal(keys[1], (1, embed_size), jnp.float32) * 0.01,
    }
    layers = []
    in_dim = embed_size // minres ** 2
    for i in range(layer_num):
        out_dim = embed_size // minres ** 2 // 2 ** (i + 1)
        use_bias, use_norm, use_act = False, True, True
        if i == layer_num - 1:
            out_dim = shape[0]
            use_bias, use_norm, use_act = True, False, False
        if i != 0:
            in_dim = 2 ** (layer_num - (i - 1) - 2) * depth
        w_pt = jax.random.normal(keys[2 + 2 * i], (in_dim, out_dim, 4, 4),
                                 jnp.float32) / np.sqrt(in_dim * 16)
        b = (jax.random.normal(keys[3 + 2 * i], (1, out_dim), jnp.float32) * 0.01
             if use_bias else jnp.zeros((1, out_dim), jnp.float32))
        gamma = jnp.ones((1, out_dim), jnp.float32)
        beta = jnp.zeros((1, out_dim), jnp.float32)
        eye4 = jnp.eye(4, dtype=jnp.float32)
        # LN reduce + broadcast constants (review #3):
        #   ln_sum  (P, 8): column g holds 1/cout over phase-group g (last 4 cols zero)
        #   ln_bcast(8, P): row g is the 0/1 indicator of phase-group g (last 4 rows zero)
        ln_sum = jnp.pad(jnp.kron(eye4, jnp.ones((out_dim, 1), jnp.float32)) / out_dim,
                         ((0, 0), (0, 4)))
        ln_bcast = jnp.pad(jnp.kron(eye4, jnp.ones((1, out_dim), jnp.float32)),
                           ((0, 4), (0, 0)))
        layers.append(dict(
            w_pt=w_pt, w_stack=_build_weight_stack(w_pt),
            ln_sum=ln_sum, ln_bcast=ln_bcast,
            b=b, gamma=gamma, beta=beta,
            b4=jnp.tile(b, (1, 4)), g4=jnp.tile(gamma, (1, 4)),
            bt4=jnp.tile(beta, (1, 4)),
            cin=in_dim, cout=out_dim,
            use_bias=use_bias, use_norm=use_norm, use_act=use_act))
    params["layers"] = layers
    params["meta"] = dict(embed_size=embed_size, minres=minres, shape=shape)
    return params


# ------------------------------ forward pass ----------------------------------
def conv_decoder_v3_forward(params, features):
    meta = params["meta"]
    minres, embed, shape = meta["minres"], meta["embed_size"], meta["shape"]
    batch_dims = features.shape[:-1]
    f2 = features.reshape(-1, features.shape[-1])
    B = f2.shape[0]
    x = linear_pallas(f2, params["lin_w_bf"], params["lin_b"])     # (B, embed) bf16
    C0 = embed // minres ** 2
    # reshape([-1,minres,minres,C]).permute(0,3,1,2) in NCHW == NHWC here.
    x = x.reshape(B, minres, minres, C0)
    n_layers = len(params["layers"])
    for idx, lyr in enumerate(params["layers"]):
        x = deconv_layer_pallas(x, lyr, final=(idx == n_layers - 1))  # NHWC, 2x up
    out_nchw = jnp.transpose(x, (0, 3, 1, 2))
    # TODO(synk): cnn_sigmoid=True branch (sigmoid(mean) - 0.5) not exercised
    # (module default is False).
    return out_nchw.reshape(batch_dims + tuple(shape))


# ------------------------- pure-JAX reference (check) -------------------------
def conv_decoder_v3_reference(params, features):
    meta = params["meta"]
    minres, embed, shape = meta["minres"], meta["embed_size"], meta["shape"]
    batch_dims = features.shape[:-1]
    f2 = features.reshape(-1, features.shape[-1])
    x = jnp.dot(f2, params["lin_w"],
                precision=jax.lax.Precision.HIGHEST) + params["lin_b"]
    B = f2.shape[0]
    x = x.reshape(B, minres, minres, embed // minres ** 2).transpose(0, 3, 1, 2)
    for lyr in params["layers"]:
        k = jnp.transpose(lyr["w_pt"][:, :, ::-1, ::-1], (1, 0, 2, 3))
        x = jax.lax.conv_general_dilated(
            x, k, window_strides=(1, 1), padding=((2, 2), (2, 2)),
            lhs_dilation=(2, 2), rhs_dilation=(1, 1),
            dimension_numbers=("NCHW", "OIHW", "NCHW"),
            precision=jax.lax.Precision.HIGHEST)
        if lyr["use_bias"]:
            x = x + lyr["b"][0][None, :, None, None]
        if lyr["use_norm"]:
            xn = jnp.transpose(x, (0, 2, 3, 1))
            mu = xn.mean(-1, keepdims=True)
            var = ((xn - mu) ** 2).mean(-1, keepdims=True)
            xn = (xn - mu) * jax.lax.rsqrt(var + LN_EPS)
            xn = xn * lyr["gamma"][0] + lyr["beta"][0]
            x = jnp.transpose(xn, (0, 3, 1, 2))
        if lyr["use_act"]:
            x = jnp.where(x > 0, x, jnp.exp(x) - 1.0)
    return x.reshape(batch_dims + tuple(shape))


if __name__ == "__main__":
    key = jax.random.PRNGKey(0)
    kp, kf = jax.random.split(key)
    feat_size, batch = 32, 2
    # Small config: shape=(3,16,16), depth=8, minres=4 -> 2 ConvTranspose layers.
    params = init_decoder_params(kp, feat_size, shape=(3, 16, 16),
                                 depth=8, minres=4)
    features = jax.random.normal(kf, (batch, feat_size), jnp.float32)

    fwd = jax.jit(lambda f: conv_decoder_v3_forward(params, f))
    out = jax.block_until_ready(fwd(features))
    assert out.shape == (batch, 3, 16, 16), out.shape

    ref = conv_decoder_v3_reference(params, features)
    max_err = float(jnp.max(jnp.abs(out - ref)))
    rel_l2 = float(jnp.linalg.norm(out - ref) / jnp.linalg.norm(ref))
    # bf16 MXU inputs, bf16 weights and bf16 inter-layer activations vs an f32
    # HIGHEST-precision reference -> tolerance is deliberately loose.
    assert jnp.allclose(out, ref, atol=1e-1, rtol=1e-1), f"max abs err {max_err}"
    assert rel_l2 < 5e-2, f"relative L2 err {rel_l2}"
    print("KERNEL_OK")
</pallas_src>

<mosaic_0001>
module attributes {stable_mosaic.version = 11 : i64} {
  func.func @_linear_kernel(%arg0: i32, %arg1: i32, %arg2: i32, %arg3: memref<2x32xbf16, #tpu.memory_space<vmem>>, %arg4: memref<32x256xbf16, #tpu.memory_space<vmem>>, %arg5: memref<1x256xf32, #tpu.memory_space<vmem>>, %arg6: memref<2x256xbf16, #tpu.memory_space<vmem>>, %arg7: memref<2x256xf32, #tpu.memory_space<vmem>>) attributes {dimension_semantics = [#tpu.dimension_semantics<parallel>, #tpu.dimension_semantics<parallel>, #tpu.dimension_semantics<arbitrary>], iteration_bounds = array<i64: 1, 1, 1>, scalar_prefetch = 0 : i64, scratch_operands = 1 : i64, tpu.core_type = #tpu.core_type<tc>, window_params = [{transform_indices = @transform_0, window_bounds = array<i64: 2, 32>}, {transform_indices = @transform_1, window_bounds = array<i64: 32, 256>}, {transform_indices = @transform_2, window_bounds = array<i64: 1, 256>}, {transform_indices = @transform_3, window_bounds = array<i64: 2, 256>}]} {
    %c0_i32 = arith.constant 0 : i32
    %0 = arith.cmpi eq, %arg2, %c0_i32 : i32
    %1 = arith.extui %0 : i1 to i32
    %c0_i32_0 = arith.constant 0 : i32
    %2 = arith.cmpi ne, %1, %c0_i32_0 : i32
    scf.if %2 {
      %cst_10 = arith.constant 0.000000e+00 : f32
      %12 = vector.broadcast %cst_10 : f32 to vector<2x256xf32>
      %c0_11 = arith.constant 0 : index
      %c0_12 = arith.constant 0 : index
      %13 = vector.load %arg7[%c0_11, %c0_12] : memref<2x256xf32, #tpu.memory_space<vmem>>, vector<2x256xf32>
      tpu.vector_store %arg7[%c0_11, %c0_12], %12 {strides = array<i32>} : memref<2x256xf32, #tpu.memory_space<vmem>>, vector<2x256xf32>,
    } else {
    }
    %c0 = arith.constant 0 : index
    %c0_1 = arith.constant 0 : index
    %3 = vector.load %arg7[%c0, %c0_1] : memref<2x256xf32, #tpu.memory_space<vmem>>, vector<2x256xf32>
    %c0_2 = arith.constant 0 : index
    %c0_3 = arith.constant 0 : index
    %4 = vector.load %arg3[%c0_2, %c0_3] : memref<2x32xbf16, #tpu.memory_space<vmem>>, vector<2x32xbf16>
    %c0_4 = arith.constant 0 : index
    %c0_5 = arith.constant 0 : index
    %5 = vector.load %arg4[%c0_4, %c0_5] : memref<32x256xbf16, #tpu.memory_space<vmem>>, vector<32x256xbf16>
    %cst = arith.constant dense<0.000000e+00> : vector<2x256xf32>
    %6 = tpu.matmul %4, %5, %cst {dimension_numbers = #tpu.dot_dimension_numbers<[1], [0], [0], [1], [0, 0, 1, 1], [], []>} : vector<2x32xbf16>, vector<32x256xbf16>, vector<2x256xf32> -> vector<2x256xf32>
    %7 = arith.addf %3, %6 : vector<2x256xf32>
    %c0_6 = arith.constant 0 : index
    %c0_7 = arith.constant 0 : index
    %8 = vector.load %arg7[%c0_6, %c0_7] : memref<2x256xf32, #tpu.memory_space<vmem>>, vector<2x256xf32>
    tpu.vector_store %arg7[%c0_6, %c0_7], %7 {strides = array<i32>} : memref<2x256xf32, #tpu.memory_space<vmem>>, vector<2x256xf32>,
    %c0_i32_8 = arith.constant 0 : i32
    %9 = arith.cmpi eq, %arg2, %c0_i32_8 : i32
    %10 = arith.extui %9 : i1 to i32
    %c0_i32_9 = arith.constant 0 : i32
    %11 = arith.cmpi ne, %10, %c0_i32_9 : i32
    scf.if %11 {
      %c0_10 = arith.constant 0 : index
      %c0_11 = arith.constant 0 : index
      %12 = vector.load %arg7[%c0_10, %c0_11] : memref<2x256xf32, #tpu.memory_space<vmem>>, vector<2x256xf32>
      %c0_12 = arith.constant 0 : index
      %c0_13 = arith.constant 0 : index
      %13 = vector.load %arg5[%c0_12, %c0_13] : memref<1x256xf32, #tpu.memory_space<vmem>>, vector<1x256xf32>
      %14 = vector.broadcast %13 : vector<1x256xf32> to vector<2x256xf32>
      %15 = arith.addf %12, %14 : vector<2x256xf32>
      %16 = arith.truncf %15 : vector<2x256xf32> to vector<2x256xbf16>
      %c0_14 = arith.constant 0 : index
      %c0_15 = arith.constant 0 : index
      %17 = vector.load %arg6[%c0_14, %c0_15] : memref<2x256xbf16, #tpu.memory_space<vmem>>, vector<2x256xbf16>
      tpu.vector_store %arg6[%c0_14, %c0_15], %16 {strides = array<i32>} : memref<2x256xbf16, #tpu.memory_space<vmem>>, vector<2x256xbf16>,
    } else {
    }
    return
  }
  func.func @transform_0(%arg0: i32, %arg1: i32, %arg2: i32) -> (i32, i32) {
    %c0_i32 = arith.constant 0 : i32
    return %arg0, %arg2 : i32, i32
  }
  func.func @transform_1(%arg0: i32, %arg1: i32, %arg2: i32) -> (i32, i32) {
    %c0_i32 = arith.constant 0 : i32
    return %arg2, %arg1 : i32, i32
  }
  func.func @transform_2(%arg0: i32, %arg1: i32, %arg2: i32) -> (i32, i32) {
    %c0_i32 = arith.constant 0 : i32
    %c0_i32_0 = arith.constant 0 : i32
    return %c0_i32, %arg1 : i32, i32
  }
  func.func @transform_3(%arg0: i32, %arg1: i32, %arg2: i32) -> (i32, i32) {
    %c0_i32 = arith.constant 0 : i32
    return %arg0, %arg1 : i32, i32
  }
}

module attributes {stable_mosaic.version = 11 : i64} {
  func.func @kernel(%arg0: i32, %arg1: memref<48x16xbf16, #tpu.memory_space<vmem>>, %arg2: memref<144x32xbf16, #tpu.memory_space<vmem>>, %arg3: memref<32x8xf32, #tpu.memory_space<vmem>>, %arg4: memref<8x32xf32, #tpu.memory_space<vmem>>, %arg5: memref<1x32xf32, #tpu.memory_space<vmem>>, %arg6: memref<1x32xf32, #tpu.memory_space<vmem>>, %arg7: memref<48x32xbf16, #tpu.memory_space<vmem>>) attributes {dimension_semantics = [#tpu.dimension_semantics<parallel>], iteration_bounds = array<i64: 2>, scalar_prefetch = 0 : i64, scratch_operands = 0 : i64, tpu.core_type = #tpu.core_type<tc>, window_params = [{transform_indices = @transform_0, window_bounds = array<i64: 48, 16>}, {pipeline_mode = #tpu.pipeline_mode<synchronous>, transform_indices = @transform_1, window_bounds = array<i64: 144, 32>}, {pipeline_mode = #tpu.pipeline_mode<synchronous>, transform_indices = @transform_2, window_bounds = array<i64: 32, 8>}, {pipeline_mode = #tpu.pipeline_mode<synchronous>, transform_indices = @transform_3, window_bounds = array<i64: 8, 32>}, {pipeline_mode = #tpu.pipeline_mode<synchronous>, transform_indices = @transform_4, window_bounds = array<i64: 1, 32>}, {pipeline_mode = #tpu.pipeline_mode<synchronous>, transform_indices = @transform_5, window_bounds = array<i64: 1, 32>}, {transform_indices = @transform_6, window_bounds = array<i64: 48, 32>}]} {
    %c0 = arith.constant 0 : index
    %c0_0 = arith.constant 0 : index
    %0 = vector.load %arg1[%c0, %c0_0] : memref<48x16xbf16, #tpu.memory_space<vmem>>, vector<48x16xbf16>
    %1 = arith.extf %0 : vector<48x16xbf16> to vector<48x16xf32>
    %cst = arith.constant 0.000000e+00 : f32
    %2 = vector.broadcast %cst : f32 to vector<48x32xf32>
    %c7_i32 = arith.constant 7 : i32
    %3 = tpu.dynamic_rotate %1 by %c7_i32 dim 0 : vector<48x16xf32>, i32 -> vector<48x16xf32>
    %4 = arith.truncf %3 : vector<48x16xf32> to vector<48x16xbf16>
    %c0_1 = arith.constant 0 : index
    %c0_2 = arith.constant 0 : index
    %5 = vector.load %arg2[%c0_1, %c0_2] : memref<144x32xbf16, #tpu.memory_space<vmem>>, vector<16x32xbf16>
    %cst_3 = arith.constant dense<0.000000e+00> : vector<48x32xf32>
    %6 = tpu.matmul %4, %5, %cst_3 {dimension_numbers = #tpu.dot_dimension_numbers<[1], [0], [0], [1], [0, 0, 1, 1], [], []>} : vector<48x16xbf16>, vector<16x32xbf16>, vector<48x32xf32> -> vector<48x32xf32>
    %7 = arith.addf %2, %6 : vector<48x32xf32>
    %c6_i32 = arith.constant 6 : i32
    %8 = tpu.dynamic_rotate %1 by %c6_i32 dim 0 : vector<48x16xf32>, i32 -> vector<48x16xf32>
    %9 = arith.truncf %8 : vector<48x16xf32> to vector<48x16xbf16>
    %c16 = arith.constant 16 : index
    %c0_4 = arith.constant 0 : index
    %10 = vector.load %arg2[%c16, %c0_4] : memref<144x32xbf16, #tpu.memory_space<vmem>>, vector<16x32xbf16>
    %cst_5 = arith.constant dense<0.000000e+00> : vector<48x32xf32>
    %11 = tpu.matmul %9, %10, %cst_5 {dimension_numbers = #tpu.dot_dimension_numbers<[1], [0], [0], [1], [0, 0, 1, 1], [], []>} : vector<48x16xbf16>, vector<16x32xbf16>, vector<48x32xf32> -> vector<48x32xf32>
    %12 = arith.addf %7, %11 : vector<48x32xf32>
    %c5_i32 = arith.constant 5 : i32
    %13 = tpu.dynamic_rotate %1 by %c5_i32 dim 0 : vector<48x16xf32>, i32 -> vector<48x16xf32>
    %14 = arith.truncf %13 : vector<48x16xf32> to vector<48x16xbf16>
    %c32 = arith.constant 32 : index
    %c0_6 = arith.constant 0 : index
    %15 = vector.load %arg2[%c32, %c0_6] : memref<144x32xbf16, #tpu.memory_space<vmem>>, vector<16x32xbf16>
    %cst_7 = arith.constant dense<0.000000e+00> : vector<48x32xf32>
    %16 = tpu.matmul %14, %15, %cst_7 {dimension_numbers = #tpu.dot_dimension_numbers<[1], [0], [0], [1], [0, 0, 1, 1], [], []>} : vector<48x16xbf16>, vector<16x32xbf16>, vector<48x32xf32> -> vector<48x32xf32>
    %17 = arith.addf %12, %16 : vector<48x32xf32>
    %c1_i32 = arith.constant 1 : i32
    %18 = tpu.dynamic_rotate %1 by %c1_i32 dim 0 : vector<48x16xf32>, i32 -> vector<48x16xf32>
    %19 = arith.truncf %18 : vector<48x16xf32> to vector<48x16xbf16>
    %c48 = arith.constant 48 : index
    %c0_8 = arith.constant 0 : index
    %20 = vector.load %arg2[%c48, %c0_8] : memref<144x32xbf16, #tpu.memory_space<vmem>>, vector<16x32xbf16>
    %cst_9 = arith.constant dense<0.000000e+00> : vector<48x32xf32>
    %21 = tpu.matmul %19, %20, %cst_9 {dimension_numbers = #tpu.dot_dimension_numbers<[1], [0], [0], [1], [0, 0, 1, 1], [], []>} : vector<48x16xbf16>, vector<16x32xbf16>, vector<48x32xf32> -> vector<48x32xf32>
    %22 = arith.addf %17, %21 : vector<48x32xf32>
    %c64 = arith.constant 64 : index
    %c0_10 = arith.constant 0 : index
    %23 = vector.load %arg2[%c64, %c0_10] : memref<144x32xbf16, #tpu.memory_space<vmem>>, vector<16x32xbf16>
    %cst_11 = arith.constant dense<0.000000e+00> : vector<48x32xf32>
    %24 = tpu.matmul %0, %23, %cst_11 {dimension_numbers = #tpu.dot_dimension_numbers<[1], [0], [0], [1], [0, 0, 1, 1], [], []>} : vector<48x16xbf16>, vector<16x32xbf16>, vector<48x32xf32> -> vector<48x32xf32>
    %25 = arith.addf %22, %24 : vector<48x32xf32>
    %c47_i32 = arith.constant 47 : i32
    %26 = tpu.dynamic_rotate %1 by %c47_i32 dim 0 : vector<48x16xf32>, i32 -> vector<48x16xf32>
    %27 = arith.truncf %26 : vector<48x16xf32> to vector<48x16xbf16>
    %c80 = arith.constant 80 : index
    %c0_12 = arith.constant 0 : index
    %28 = vector.load %arg2[%c80, %c0_12] : memref<144x32xbf16, #tpu.memory_space<vmem>>, vector<16x32xbf16>
    %cst_13 = arith.constant dense<0.000000e+00> : vector<48x32xf32>
    %29 = tpu.matmul %27, %28, %cst_13 {dimension_numbers = #tpu.dot_dimension_numbers<[1], [0], [0], [1], [0, 0, 1, 1], [], []>} : vector<48x16xbf16>, vector<16x32xbf16>, vector<48x32xf32> -> vector<48x32xf32>
    %30 = arith.addf %25, %29 : vector<48x32xf32>
    %c43_i32 = arith.constant 43 : i32
    %31 = tpu.dynamic_rotate %1 by %c43_i32 dim 0 : vector<48x16xf32>, i32 -> vector<48x16xf32>
    %32 = arith.truncf %31 : vector<48x16xf32> to vector<48x16xbf16>
    %c96 = arith.constant 96 : index
    %c0_14 = arith.constant 0 : index
    %33 = vector.load %arg2[%c96, %c0_14] : memref<144x32xbf16, #tpu.memory_space<vmem>>, vector<16x32xbf16>
    %cst_15 = arith.constant dense<0.000000e+00> : vector<48x32xf32>
    %34 = tpu.matmul %32, %33, %cst_15 {dimension_numbers = #tpu.dot_dimension_numbers<[1], [0], [0], [1], [0, 0, 1, 1], [], []>} : vector<48x16xbf16>, vector<16x32xbf16>, vector<48x32xf32> -> vector<48x32xf32>
    %35 = arith.addf %30, %34 : vector<48x32xf32>
    %c42_i32 = arith.constant 42 : i32
    %36 = tpu.dynamic_rotate %1 by %c42_i32 dim 0 : vector<48x16xf32>, i32 -> vector<48x16xf32>
    %37 = arith.truncf %36 : vector<48x16xf32> to vector<48x16xbf16>
    %c112 = arith.constant 112 : index
    %c0_16 = arith.constant 0 : index
    %38 = vector.load %arg2[%c112, %c0_16] : memref<144x32xbf16, #tpu.memory_space<vmem>>, vector<16x32xbf16>
    %cst_17 = arith.constant dense<0.000000e+00> : vector<48x32xf32>
    %39 = tpu.matmul %37, %38, %cst_17 {dimension_numbers = #tpu.dot_dimension_numbers<[1], [0], [0], [1], [0, 0, 1, 1], [], []>} : vector<48x16xbf16>, vector<16x32xbf16>, vector<48x32xf32> -> vector<48x32xf32>
    %40 = arith.addf %35, %39 : vector<48x32xf32>
    %c41_i32 = arith.constant 41 : i32
    %41 = tpu.dynamic_rotate %1 by %c41_i32 dim 0 : vector<48x16xf32>, i32 -> vector<48x16xf32>
    %42 = arith.truncf %41 : vector<48x16xf32> to vector<48x16xbf16>
    %c128 = arith.constant 128 : index
    %c0_18 = arith.constant 0 : index
    %43 = vector.load %arg2[%c128, %c0_18] : memref<144x32xbf16, #tpu.memory_space<vmem>>, vector<16x32xbf16>
    %cst_19 = arith.constant dense<0.000000e+00> : vector<48x32xf32>
    %44 = tpu.matmul %42, %43, %cst_19 {dimension_numbers = #tpu.dot_dimension_numbers<[1], [0], [0], [1], [0, 0, 1, 1], [], []>} : vector<48x16xbf16>, vector<16x32xbf16>, vector<48x32xf32> -> vector<48x32xf32>
    %45 = arith.addf %40, %44 : vector<48x32xf32>
    %c0_20 = arith.constant 0 : index
    %c0_21 = arith.constant 0 : index
    %46 = vector.load %arg3[%c0_20, %c0_21] : memref<32x8xf32, #tpu.memory_space<vmem>>, vector<32x8xf32>
    %cst_22 = arith.constant dense<0.000000e+00> : vector<48x8xf32>
    %47 = tpu.matmul %45, %46, %cst_22 {dimension_numbers = #tpu.dot_dimension_numbers<[1], [0], [0], [1], [0, 0, 1, 1], [], []>} : vector<48x32xf32>, vector<32x8xf32>, vector<48x8xf32> -> vector<48x8xf32>
    %c0_23 = arith.constant 0 : index
    %c0_24 = arith.constant 0 : index
    %48 = vector.load %arg4[%c0_23, %c0_24] : memref<8x32xf32, #tpu.memory_space<vmem>>, vector<8x32xf32>
    %cst_25 = arith.constant dense<0.000000e+00> : vector<48x32xf32>
    %49 = tpu.matmul %47, %48, %cst_25 {dimension_numbers = #tpu.dot_dimension_numbers<[1], [0], [0], [1], [0, 0, 1, 1], [], []>} : vector<48x8xf32>, vector<8x32xf32>, vector<48x32xf32> -> vector<48x32xf32>
    %50 = arith.subf %45, %49 : vector<48x32xf32>
    %51 = arith.mulf %50, %50 : vector<48x32xf32>
    %c0_26 = arith.constant 0 : index
    %c0_27 = arith.constant 0 : index
    %52 = vector.load %arg3[%c0_26, %c0_27] : memref<32x8xf32, #tpu.memory_space<vmem>>, vector<32x8xf32>
    %cst_28 = arith.constant dense<0.000000e+00> : vector<48x8xf32>
    %53 = tpu.matmul %51, %52, %cst_28 {dimension_numbers = #tpu.dot_dimension_numbers<[1], [0], [0], [1], [0, 0, 1, 1], [], []>} : vector<48x32xf32>, vector<32x8xf32>, vector<48x8xf32> -> vector<48x8xf32>
    %c0_29 = arith.constant 0 : index
    %c0_30 = arith.constant 0 : index
    %54 = vector.load %arg4[%c0_29, %c0_30] : memref<8x32xf32, #tpu.memory_space<vmem>>, vector<8x32xf32>
    %cst_31 = arith.constant dense<0.000000e+00> : vector<48x32xf32>
    %55 = tpu.matmul %53, %54, %cst_31 {dimension_numbers = #tpu.dot_dimension_numbers<[1], [0], [0], [1], [0, 0, 1, 1], [], []>} : vector<48x8xf32>, vector<8x32xf32>, vector<48x32xf32> -> vector<48x32xf32>
    %cst_32 = arith.constant 1.000000e-03 : f32
    %56 = vector.broadcast %cst_32 : f32 to vector<48x32xf32>
    %57 = arith.addf %55, %56 : vector<48x32xf32>
    %58 = math.rsqrt %57 : vector<48x32xf32>
    %59 = arith.mulf %50, %58 : vector<48x32xf32>
    %c0_33 = arith.constant 0 : index
    %c0_34 = arith.constant 0 : index
    %60 = vector.load %arg5[%c0_33, %c0_34] : memref<1x32xf32, #tpu.memory_space<vmem>>, vector<1x32xf32>
    %61 = vector.broadcast %60 : vector<1x32xf32> to vector<48x32xf32>
    %62 = arith.mulf %59, %61 : vector<48x32xf32>
    %c0_35 = arith.constant 0 : index
    %c0_36 = arith.constant 0 : index
    %63 = vector.load %arg6[%c0_35, %c0_36] : memref<1x32xf32, #tpu.memory_space<vmem>>, vector<1x32xf32>
    %64 = vector.broadcast %63 : vector<1x32xf32> to vector<48x32xf32>
    %65 = arith.addf %62, %64 : vector<48x32xf32>
    %cst_37 = arith.constant 0.000000e+00 : f32
    %66 = vector.broadcast %cst_37 : f32 to vector<48x32xf32>
    %67 = arith.cmpf ogt, %65, %66 : vector<48x32xf32>
    %cst_38 = arith.constant 0.000000e+00 : f32
    %68 = vector.broadcast %cst_38 : f32 to vector<48x32xf32>
    %69 = arith.minimumf %65, %68 : vector<48x32xf32>
    %70 = math.exp %69 : vector<48x32xf32>
    %cst_39 = arith.constant 1.000000e+00 : f32
    %71 = vector.broadcast %cst_39 : f32 to vector<48x32xf32>
    %72 = arith.subf %70, %71 : vector<48x32xf32>
    %73 = arith.select %67, %65, %72 : vector<48x32xi1>, vector<48x32xf32>
    %74 = arith.truncf %73 : vector<48x32xf32> to vector<48x32xbf16>
    %c0_40 = arith.constant 0 : index
    %c0_41 = arith.constant 0 : index
    %75 = vector.load %arg7[%c0_40, %c0_41] : memref<48x32xbf16, #tpu.memory_space<vmem>>, vector<48x32xbf16>
    tpu.vector_store %arg7[%c0_40, %c0_41], %74 {strides = array<i32>} : memref<48x32xbf16, #tpu.memory_space<vmem>>, vector<48x32xbf16>,
    return
  }
  func.func @transform_0(%arg0: i32) -> (i32, i32) {
    %c0_i32 = arith.constant 0 : i32
    %c0_i32_0 = arith.constant 0 : i32
    return %arg0, %c0_i32 : i32, i32
  }
  func.func @transform_1(%arg0: i32) -> (i32, i32) {
    %c0_i32 = arith.constant 0 : i32
    %c0_i32_0 = arith.constant 0 : i32
    %c0_i32_1 = arith.constant 0 : i32
    return %c0_i32, %c0_i32_0 : i32, i32
  }
  func.func @transform_2(%arg0: i32) -> (i32, i32) {
    %c0_i32 = arith.constant 0 : i32
    %c0_i32_0 = arith.constant 0 : i32
    %c0_i32_1 = arith.constant 0 : i32
    return %c0_i32, %c0_i32_0 : i32, i32
  }
  func.func @transform_3(%arg0: i32) -> (i32, i32) {
    %c0_i32 = arith.constant 0 : i32
    %c0_i32_0 = arith.constant 0 : i32
    %c0_i32_1 = arith.constant 0 : i32
    return %c0_i32, %c0_i32_0 : i32, i32
  }
  func.func @transform_4(%arg0: i32) -> (i32, i32) {
    %c0_i32 = arith.constant 0 : i32
    %c0_i32_0 = arith.constant 0 : i32
    %c0_i32_1 = arith.constant 0 : i32
    return %c0_i32, %c0_i32_0 : i32, i32
  }
  func.func @transform_5(%arg0: i32) -> (i32, i32) {
    %c0_i32 = arith.constant 0 : i32
    %c0_i32_0 = arith.constant 0 : i32
    %c0_i32_1 = arith.constant 0 : i32
    return %c0_i32, %c0_i32_0 : i32, i32
  }
  func.func @transform_6(%arg0: i32) -> (i32, i32) {
    %c0_i32 = arith.constant 0 : i32
    %c0_i32_0 = arith.constant 0 : i32
    return %arg0, %c0_i32 : i32, i32
  }
}

module attributes {stable_mosaic.version = 11 : i64} {
  func.func @kernel(%arg0: i32, %arg1: memref<112x8xbf16, #tpu.memory_space<vmem>>, %arg2: memref<72x12xbf16, #tpu.memory_space<vmem>>, %arg3: memref<1x12xf32, #tpu.memory_space<vmem>>, %arg4: memref<112x12xf32, #tpu.memory_space<vmem>>) attributes {dimension_semantics = [#tpu.dimension_semantics<parallel>], iteration_bounds = array<i64: 2>, scalar_prefetch = 0 : i64, scratch_operands = 0 : i64, tpu.core_type = #tpu.core_type<tc>, window_params = [{transform_indices = @transform_0, window_bounds = array<i64: 112, 8>}, {pipeline_mode = #tpu.pipeline_mode<synchronous>, transform_indices = @transform_1, window_bounds = array<i64: 72, 12>}, {pipeline_mode = #tpu.pipeline_mode<synchronous>, transform_indices = @transform_2, window_bounds = array<i64: 1, 12>}, {transform_indices = @transform_3, window_bounds = array<i64: 112, 12>}]} {
    %c0 = arith.constant 0 : index
    %c0_0 = arith.constant 0 : index
    %0 = vector.load %arg1[%c0, %c0_0] : memref<112x8xbf16, #tpu.memory_space<vmem>>, vector<112x8xbf16>
    %1 = arith.extf %0 : vector<112x8xbf16> to vector<112x8xf32>
    %cst = arith.constant 0.000000e+00 : f32
    %2 = vector.broadcast %cst : f32 to vector<112x12xf32>
    %c11_i32 = arith.constant 11 : i32
    %3 = tpu.dynamic_rotate %1 by %c11_i32 dim 0 : vector<112x8xf32>, i32 -> vector<112x8xf32>
    %4 = arith.truncf %3 : vector<112x8xf32> to vector<112x8xbf16>
    %c0_1 = arith.constant 0 : index
    %c0_2 = arith.constant 0 : index
    %5 = vector.load %arg2[%c0_1, %c0_2] : memref<72x12xbf16, #tpu.memory_space<vmem>>, vector<8x12xbf16>
    %cst_3 = arith.constant dense<0.000000e+00> : vector<112x12xf32>
    %6 = tpu.matmul %4, %5, %cst_3 {dimension_numbers = #tpu.dot_dimension_numbers<[1], [0], [0], [1], [0, 0, 1, 1], [], []>} : vector<112x8xbf16>, vector<8x12xbf16>, vector<112x12xf32> -> vector<112x12xf32>
    %7 = arith.addf %2, %6 : vector<112x12xf32>
    %c10_i32 = arith.constant 10 : i32
    %8 = tpu.dynamic_rotate %1 by %c10_i32 dim 0 : vector<112x8xf32>, i32 -> vector<112x8xf32>
    %9 = arith.truncf %8 : vector<112x8xf32> to vector<112x8xbf16>
    %c8 = arith.constant 8 : index
    %c0_4 = arith.constant 0 : index
    %10 = vector.load %arg2[%c8, %c0_4] : memref<72x12xbf16, #tpu.memory_space<vmem>>, vector<8x12xbf16>
    %cst_5 = arith.constant dense<0.000000e+00> : vector<112x12xf32>
    %11 = tpu.matmul %9, %10, %cst_5 {dimension_numbers = #tpu.dot_dimension_numbers<[1], [0], [0], [1], [0, 0, 1, 1], [], []>} : vector<112x8xbf16>, vector<8x12xbf16>, vector<112x12xf32> -> vector<112x12xf32>
    %12 = arith.addf %7, %11 : vector<112x12xf32>
    %c9_i32 = arith.constant 9 : i32
    %13 = tpu.dynamic_rotate %1 by %c9_i32 dim 0 : vector<112x8xf32>, i32 -> vector<112x8xf32>
    %14 = arith.truncf %13 : vector<112x8xf32> to vector<112x8xbf16>
    %c16 = arith.constant 16 : index
    %c0_6 = arith.constant 0 : index
    %15 = vector.load %arg2[%c16, %c0_6] : memref<72x12xbf16, #tpu.memory_space<vmem>>, vector<8x12xbf16>
    %cst_7 = arith.constant dense<0.000000e+00> : vector<112x12xf32>
    %16 = tpu.matmul %14, %15, %cst_7 {dimension_numbers = #tpu.dot_dimension_numbers<[1], [0], [0], [1], [0, 0, 1, 1], [], []>} : vector<112x8xbf16>, vector<8x12xbf16>, vector<112x12xf32> -> vector<112x12xf32>
    %17 = arith.addf %12, %16 : vector<112x12xf32>
    %c1_i32 = arith.constant 1 : i32
    %18 = tpu.dynamic_rotate %1 by %c1_i32 dim 0 : vector<112x8xf32>, i32 -> vector<112x8xf32>
    %19 = arith.truncf %18 : vector<112x8xf32> to vector<112x8xbf16>
    %c24 = arith.constant 24 : index
    %c0_8 = arith.constant 0 : index
    %20 = vector.load %arg2[%c24, %c0_8] : memref<72x12xbf16, #tpu.memory_space<vmem>>, vector<8x12xbf16>
    %cst_9 = arith.constant dense<0.000000e+00> : vector<112x12xf32>
    %21 = tpu.matmul %19, %20, %cst_9 {dimension_numbers = #tpu.dot_dimension_numbers<[1], [0], [0], [1], [0, 0, 1, 1], [], []>} : vector<112x8xbf16>, vector<8x12xbf16>, vector<112x12xf32> -> vector<112x12xf32>
    %22 = arith.addf %17, %21 : vector<112x12xf32>
    %c32 = arith.constant 32 : index
    %c0_10 = arith.constant 0 : index
    %23 = vector.load %arg2[%c32, %c0_10] : memref<72x12xbf16, #tpu.memory_space<vmem>>, vector<8x12xbf16>
    %cst_11 = arith.constant dense<0.000000e+00> : vector<112x12xf32>
    %24 = tpu.matmul %0, %23, %cst_11 {dimension_numbers = #tpu.dot_dimension_numbers<[1], [0], [0], [1], [0, 0, 1, 1], [], []>} : vector<112x8xbf16>, vector<8x12xbf16>, vector<112x12xf32> -> vector<112x12xf32>
    %25 = arith.addf %22, %24 : vector<112x12xf32>
    %c111_i32 = arith.constant 111 : i32
    %26 = tpu.dynamic_rotate %1 by %c111_i32 dim 0 : vector<112x8xf32>, i32 -> vector<112x8xf32>
    %27 = arith.truncf %26 : vector<112x8xf32> to vector<112x8xbf16>
    %c40 = arith.constant 40 : index
    %c0_12 = arith.constant 0 : index
    %28 = vector.load %arg2[%c40, %c0_12] : memref<72x12xbf16, #tpu.memory_space<vmem>>, vector<8x12xbf16>
    %cst_13 = arith.constant dense<0.000000e+00> : vector<112x12xf32>
    %29 = tpu.matmul %27, %28, %cst_13 {dimension_numbers = #tpu.dot_dimension_numbers<[1], [0], [0], [1], [0, 0, 1, 1], [], []>} : vector<112x8xbf16>, vector<8x12xbf16>, vector<112x12xf32> -> vector<112x12xf32>
    %30 = arith.addf %25, %29 : vector<112x12xf32>
    %c103_i32 = arith.constant 103 : i32
    %31 = tpu.dynamic_rotate %1 by %c103_i32 dim 0 : vector<112x8xf32>, i32 -> vector<112x8xf32>
    %32 = arith.truncf %31 : vector<112x8xf32> to vector<112x8xbf16>
    %c48 = arith.constant 48 : index
    %c0_14 = arith.constant 0 : index
    %33 = vector.load %arg2[%c48, %c0_14] : memref<72x12xbf16, #tpu.memory_space<vmem>>, vector<8x12xbf16>
    %cst_15 = arith.constant dense<0.000000e+00> : vector<112x12xf32>
    %34 = tpu.matmul %32, %33, %cst_15 {dimension_numbers = #tpu.dot_dimension_numbers<[1], [0], [0], [1], [0, 0, 1, 1], [], []>} : vector<112x8xbf16>, vector<8x12xbf16>, vector<112x12xf32> -> vector<112x12xf32>
    %35 = arith.addf %30, %34 : vector<112x12xf32>
    %c102_i32 = arith.constant 102 : i32
    %36 = tpu.dynamic_rotate %1 by %c102_i32 dim 0 : vector<112x8xf32>, i32 -> vector<112x8xf32>
    %37 = arith.truncf %36 : vector<112x8xf32> to vector<112x8xbf16>
    %c56 = arith.constant 56 : index
    %c0_16 = arith.constant 0 : index
    %38 = vector.load %arg2[%c56, %c0_16] : memref<72x12xbf16, #tpu.memory_space<vmem>>, vector<8x12xbf16>
    %cst_17 = arith.constant dense<0.000000e+00> : vector<112x12xf32>
    %39 = tpu.matmul %37, %38, %cst_17 {dimension_numbers = #tpu.dot_dimension_numbers<[1], [0], [0], [1], [0, 0, 1, 1], [], []>} : vector<112x8xbf16>, vector<8x12xbf16>, vector<112x12xf32> -> vector<112x12xf32>
    %40 = arith.addf %35, %39 : vector<112x12xf32>
    %c101_i32 = arith.constant 101 : i32
    %41 = tpu.dynamic_rotate %1 by %c101_i32 dim 0 : vector<112x8xf32>, i32 -> vector<112x8xf32>
    %42 = arith.truncf %41 : vector<112x8xf32> to vector<112x8xbf16>
    %c64 = arith.constant 64 : index
    %c0_18 = arith.constant 0 : index
    %43 = vector.load %arg2[%c64, %c0_18] : memref<72x12xbf16, #tpu.memory_space<vmem>>, vector<8x12xbf16>
    %cst_19 = arith.constant dense<0.000000e+00> : vector<112x12xf32>
    %44 = tpu.matmul %42, %43, %cst_19 {dimension_numbers = #tpu.dot_dimension_numbers<[1], [0], [0], [1], [0, 0, 1, 1], [], []>} : vector<112x8xbf16>, vector<8x12xbf16>, vector<112x12xf32> -> vector<112x12xf32>
    %45 = arith.addf %40, %44 : vector<112x12xf32>
    %c0_20 = arith.constant 0 : index
    %c0_21 = arith.constant 0 : index
    %46 = vector.load %arg3[%c0_20, %c0_21] : memref<1x12xf32, #tpu.memory_space<vmem>>, vector<1x12xf32>
    %47 = vector.broadcast %46 : vector<1x12xf32> to vector<112x12xf32>
    %48 = arith.addf %45, %47 : vector<112x12xf32>
    %c0_22 = arith.constant 0 : index
    %c0_23 = arith.constant 0 : index
    %49 = vector.load %arg4[%c0_22, %c0_23] : memref<112x12xf32, #tpu.memory_space<vmem>>, vector<112x12xf32>
    tpu.vector_store %arg4[%c0_22, %c0_23], %48 {strides = array<i32>} : memref<112x12xf32, #tpu.memory_space<vmem>>, vector<112x12xf32>,
    return
  }
  func.func @transform_0(%arg0: i32) -> (i32, i32) {
    %c0_i32 = arith.constant 0 : i32
    %c0_i32_0 = arith.constant 0 : i32
    return %arg0, %c0_i32 : i32, i32
  }
  func.func @transform_1(%arg0: i32) -> (i32, i32) {
    %c0_i32 = arith.constant 0 : i32
    %c0_i32_0 = arith.constant 0 : i32
    %c0_i32_1 = arith.constant 0 : i32
    return %c0_i32, %c0_i32_0 : i32, i32
  }
  func.func @transform_2(%arg0: i32) -> (i32, i32) {
    %c0_i32 = arith.constant 0 : i32
    %c0_i32_0 = arith.constant 0 : i32
    %c0_i32_1 = arith.constant 0 : i32
    return %c0_i32, %c0_i32_0 : i32, i32
  }
  func.func @transform_3(%arg0: i32) -> (i32, i32) {
    %c0_i32 = arith.constant 0 : i32
    %c0_i32_0 = arith.constant 0 : i32
    return %arg0, %c0_i32 : i32, i32
  }
}

</mosaic_0001>

<bundles_post_ra>
// kernel: _lambda_.3
= control target key start
LH: loop header
LB: loop body
LE: loop exit
PB: predicated region body
PF: predicated region fallthrough
CT: control target
= control target key end

     0   :  { %8 = vsyncpa [#allocation4], 0  ;;  %s221_s12 = smov [#allocation3]   ;;  %s260_s0 = inlined_call_operand.vmem [shape: bf16[2,32], index: 0, kind: input, shape index: {}]   ;;  %s261_s1 = inlined_call_operand.hbm [shape: bf16[32,256], index: 1, kind: input, shape index: {}]   ;;  %s262_s2 = inlined_call_operand.vmem [shape: f32[1,256], index: 2, kind: input, shape index: {}]   ;;  %s263_s3 = inlined_call_operand.vmem [shape: bf16[2,256], index: 3, kind: output, shape index: {}]  }
   0x1   :  { %s16_s13 = sshll.u32 %s221_s12, 4  ;;  %s17_s13 = int_to_ptr.vmem [resolvable:$true] %s16_s13 }
   0x2   :  { %s207_s14 = scalar_lea.vmem %s17_s13, 512  ;;  %p212_p1 = scmp.lt.s32.totalorder %s17_s13, %s17_s13 }
   0x3   :  { %p208_p0 = scmp.ne.s32.totalorder %s17_s13, %s207_s14  ;;  %p213_p2 = scmp.lt.s32.totalorder %s207_s14, %s207_s14 }
   0x5   :  { %p214_p3 = por %p213_p2, %p212_p1 }
   0x7   :  { %p215_p4 = pnand %p214_p3, %p208_p0 }
   0x9   :  { %218 = shalt.err (!%p215_p4)
}
   0xa   :  { %s222_s15 = smov 128   ;;  %s223_s16 = smov 8  }
   0xb   :  { %22 = dma.hbm_to_vmem [thread:$0]  %s261_s1, 512, %s17_s13, [#allocation4], %s222_s15, %s222_s15, %s223_s16  }
   0xc   :  { %219 = dma.done.wait [#allocation4], 512  }
   0xd   :  { %220 = vsyncadd [#allocation4], 4294966784  ;;  %v224_v0 = vmov 0   ;;  %v193_v1 = vld [vmem:[#allocation3 + $0x14] ss:$8 sps:$4 sm:$0xff]   ;;  %vm60_vm0 = vcmask 261120   ;;  %v111_v9 = vlaneseq }
   0xe   :  { %96 = vmatprep.mubr.bf16.mxu0 %v224_v0  ;;  %v195_v2 = vld [vmem:[#allocation3 + $0x10] ss:$8 sps:$4 sm:$0xff]   ;;  %76 = vmatprep.subr.bf16.mxu0 %v193_v1  ;;  %v196_v3 = vld [vmem:[#allocation3 + $0x4] ss:$8 sps:$4 sm:$0xff]   ;;  %v198_v4 = vld [vmem:[#allocation3] ss:$8 sps:$4 sm:$0xff]  }
   0xf   :  { %77 = vmatpush1.bf16.msra.mxu0 %v195_v2  ;;  %v35_v5 = vld [vmem:[%s260_s0] sm:$0x1]  ;;  %v225_v6 = vmov 0.0   ;;  %v226_v7 = vmov 1983009808   ;;  %v112_v11 = vshrl.u32 %v111_v9, 7 }
  0x10   :  { %78 = vmatprep.subr.bf16.mxu0 %v196_v3  ;;  %33 = vst [vmem:[#allocation2] sm:$0xf] %v225_v6  ;;  %v109_v8 = vunpack.c.l.s4 %v226_v7  ;;  %v122_v17 = vld [vmem:[%s262_s2] sm:$0x3]  ;;  %v227_v28 = vmov 1966171168  }
  0x11   :  { %v126_v14 = vsub.s32 0, %v112_v11  ;;  %v130_v15 = vsub.s32 1, %v112_v11  ;;  %v159_v29 = vunpack.c.l.s4 %v227_v28 }
  0x12   :  { %v110_v10 = vunpack.c.0.s8 %v109_v8 }
  0x13   :  { %79 = vmatpush1.bf16.msra.mxu0 %v198_v4  ;;  %v127_v22 = vrot.slane %v122_v17, %v126_v14  ;;  %v131_v23 = vrot.slane %v122_v17, %v130_v15  ;;  %v160_v32 = vunpack.c.0.s8 %v159_v29 }
  0x14   :  { %v113_v13 = vsub.s32 %v110_v10, %v112_v11 }
  0x15   :  { %v132_v26 = vcombine.low %v127_v22, %v131_v23  ;;  %v163_v35 = vsub.s32 %v160_v32, %v112_v11 }
  0x16   :  { %183 = vmatmul.mubr.msk.bf16.vlgmr.msra.gmra.mxu0 %vm60_vm0, %v35_v5 }
  0x17   :  { %v34_v19 = vld [vmem:[#allocation2] sm:$0xf]  ;;  %v139_v27 = vrot.slane %v132_v26, %v113_v13 }
  0xd6   :  { %v98_v12 = vpop.f32.mrf.mxu0 }
  0xd8   :  { %v100_v16 = vpop.f32.mrf.mxu0 }
  0xd9   :  { %v107_v18 = vcombine.low %v98_v12, %v100_v16 }
  0xda   :  { %v102_v20 = vpop.f32.mrf.mxu0 }
  0xdb   :  { %v114_v21 = vrot.slane %v107_v18, %v113_v13 }
  0xdc   :  { %v103_v24 = vpop.f32.mrf.mxu0 }
  0xdd   :  { %v116_v25 = vadd.f32 %v114_v21, %v34_v19 }
  0xdf   :  { %117 = vst [vmem:[#allocation2] sm:$0xf] %v116_v25 }
  0xe6   :  { %v121_v30 = vld [vmem:[#allocation2] sm:$0xf] }
  0xe7   :  { %v141_v31 = vadd.f32 %v139_v27, %v121_v30 }
  0xe9   :  { %v149_v33 = vrot.slane %v141_v31, %v113_v13 }
  0xeb   :  { %v150_v34 = vcombine.high %v149_v33, %v149_v33 }
  0xed   :  { %v184_v36 = vpack.c.bf16 %v150_v34, %v149_v33 }
  0xef   :  { %v164_v37 = vrot.slane %v184_v36, %v163_v35 }
  0xf1   :  { %185 = vst.sshfl [vmem:[%s263_s3] sm:$0x5 pattern:$0x73625140] %v164_v37 }
  0xf2   :  { %178 = vsyncpa [#allocation4], 1 }

// kernel: _lambda_.4
= control target key start
LH: loop header
LB: loop body
LE: loop exit
PB: predicated region body
PF: predicated region fallthrough
CT: control target
= control target key end

     0   :  { %s2166_s21 = smov 0   ;;  %s2685_s0 = inlined_call_operand.vmem [shape: bf16[96,16], index: 0, kind: input, shape index: {}]   ;;  %s2686_s1 = inlined_call_operand.vmem [shape: bf16[144,32], index: 1, kind: input, shape index: {}]   ;;  %s2687_s2 = inlined_call_operand.vmem [shape: f32[32,8], index: 2, kind: input, shape index: {}]   ;;  %s2688_s3 = inlined_call_operand.vmem [shape: f32[8,32], index: 3, kind: input, shape index: {}]   ;;  %s2689_s4 = inlined_call_operand.vmem [shape: f32[1,32], index: 4, kind: input, shape index: {}]   ;;  %s2690_s5 = inlined_call_operand.vmem [shape: f32[1,32], index: 5, kind: input, shape index: {}]   ;;  %s2691_s6 = inlined_call_operand.vmem [shape: bf16[96,32], index: 6, kind: output, shape index: {}]  }
   0x1 LB: > { %s1728_s22 = sadd.s32 4294967295, %s2127_s21   ;;  %p1732_p0 = scmp.ge.s32.totalorder %s2127_s21, 1  ;;  %s2127_s21 = sphi %s2166_s21, %s16_s21  }
   0x2   : > { %p213_p1 = scmp.lt.s32.totalorder %s2127_s21, 3 }
   0x4   : > { %p214_p2 = pnand %p1732_p0, %p213_p1 }
   0x5   : > { %s243_s27 = smul.u32 (!%p214_p2), 6, %s1728_s22 }
   0x6   : > { %217 = sbr.rel (%p214_p2) target bundleno = 1166 (0x48e), region = 44 }
   0x7   : > { %p244_p3 = scmp.lt.s32.totalorder (!%p214_p2), %s243_s27, 11 }
   0xb   : > { %v2082_v0 = vld [vmem:[%s2686_s1 + $0x8] sm:$0xff]   ;;  %v2129_v1 = vmov 0.0   ;;  %v2083_v2 = vld [vmem:[%s2686_s1] sm:$0xff]   ;;  %vm2130_vm0 = vmmov 0   ;;  %v274_v3 = vlaneseq  ;;  %s2693_s27 = smov (!%p244_p3, %s243_s27), 11  ;;  %vm312_vm2 = vcmask 130048  }
   0xc   : > { %1890 = vmatprep.subr.bf16.mxu0 %v2129_v1  ;;  %1904 = vmatprep.subr.bf16.mxu1 %v2129_v1  ;;  %s1733_s28 = sshll.u32 %s2693_s27, 2  ;;  %v2084_v23 = vld [vmem:[%s2686_s1 + $0x10] sm:$0xff]   ;;  %v2085_v31 = vld [vmem:[%s2686_s1 + $0x18] sm:$0xff]   ;;  %vm1100_vm8 = vcmask 261120   ;;  %vm1215_vm9 = vcmask 64512   ;;  %vm1665_vm11 = vcmask 257024  }
   0xd   : > { %1891 = vmatpush3.bf16.msra.mxu0 %v2082_v0  ;;  %1892 = vmatprep.mubr.msk.bf16.mxu0 %vm2130_vm0, %v2129_v1  ;;  %v2191_v4 = vshrl.u32 %v274_v3, 7  ;;  %s247_s7 = scalar_lea.vmem %s2685_s0, %s1733_s28  ;;  %s2668_s17 = scalar_lea.vmem %s2691_s6, %s1733_s28 }
   0xe   : > { %1905 = vmatpush3.bf16.msra.mxu1 %v2083_v2  ;;  %1906 = vmatprep.mubr.msk.bf16.mxu1 %vm2130_vm0, %v2129_v1  ;;  %v2198_v5 = vld [vmem:[%s247_s7] sm:$0xff]   ;;  %v2200_v6 = vld [vmem:[%s247_s7 + $0x10] sm:$0xff]   ;;  %v2202_v7 = vld [vmem:[%s247_s7 + $0x8] sm:$0xff]  }
   0xf   : > { %1918 = vmatprep.subr.bf16.mxu0 %v2129_v1  ;;  %1932 = vmatprep.subr.bf16.mxu1 %v2129_v1  ;;  %v2205_v8 = vunpack.c.l.bf16 %v2198_v5  ;;  %v2208_v9 = vunpack.c.h.bf16 %v2198_v5  ;;  %v2211_v10 = vunpack.c.h.bf16 %v2200_v6  ;;  %v2214_v11 = vunpack.c.l.bf16 %v2202_v7 }
  0x10   : > { %vm294_vm1 = vcmp.lt.s32.totalorder %v2191_v4, 6  ;;  %vm276_vm3 = vcmp.lt.s32.totalorder %v2191_v4, 7  ;;  %v2219_v12 = vunpack.c.h.bf16 %v2202_v7  ;;  %v2229_v20 = vunpack.c.l.bf16 %v2200_v6 }
  0x11   : > { %v288_v13 = vrot.slane %v2205_v8, 2  ;;  %v289_v14 = vrot.slane %v2208_v9, 2  ;;  %v293_v15 = vrot.slane %v2211_v10, 2  ;;  %v268_v16 = vrot.slane %v2205_v8, 1 }
  0x12   : > { %v269_v17 = vrot.slane %v2208_v9, 1  ;;  %v273_v18 = vrot.slane %v2211_v10, 1  ;;  %v290_v19 = vrot.slane %v2214_v11, 2  ;;  %v291_v24 = vrot.slane %v2219_v12, 2 }
  0x13   : > { %v299_v21 = vsel %vm294_vm1, %v288_v13, %v289_v14  ;;  %v300_v22 = vsel %vm294_vm1, %v293_v15, %v288_v13  ;;  %v270_v25 = vrot.slane %v2214_v11, 1  ;;  %v271_v29 = vrot.slane %v2219_v12, 1 }
  0x14   : > { %v301_v26 = vpack.c.bf16 %v299_v21, %v300_v22  ;;  %v2242_v27 = vsel %vm276_vm3, %v268_v16, %v269_v17  ;;  %v2246_v28 = vsel %vm276_vm3, %v273_v18, %v268_v16  ;;  %v297_v32 = vsel %vm294_vm1, %v290_v19, %v291_v24 }
  0x15   : > { %v283_v30 = vpack.c.bf16 %v2242_v27, %v2246_v28  ;;  %v298_v33 = vsel %vm294_vm1, %v289_v14, %v290_v19  ;;  %v2266_v34 = vsel %vm276_vm3, %v270_v25, %v271_v29  ;;  %v2270_v35 = vsel %vm276_vm3, %v269_v17, %v270_v25 }
  0x16   : > { %1893 = vmatmul.mubr.msk.bf16.vlgmr.msra.gmra.mxu0 %vm312_vm2, %v301_v26  ;;  %v292_v36 = vrot.slane %v2229_v20, 2  ;;  %v272_v37 = vrot.slane %v2229_v20, 1  ;;  %v302_v38 = vpack.c.bf16 %v297_v32, %v298_v33  ;;  %v284_v39 = vpack.c.bf16 %v2266_v34, %v2270_v35 }
  0x17   : > { %1907 = vmatmul.mubr.msk.bf16.vlgmr.msra.gmra.mxu1 %vm312_vm2, %v283_v30  ;;  %1919 = vmatpush3.bf16.msra.mxu0 %v2084_v23  ;;  %v451_v40 = vrot.slane %v2205_v8, 3  ;;  %v452_v41 = vrot.slane %v2208_v9, 3  ;;  %v456_v42 = vrot.slane %v2211_v10, 3  ;;  %v547_v45 = vrot.slane %v2205_v8, 7 }
  0x18   : > { %1896 = vmatprep.mubr.msk.bf16.mxu0 %vm2130_vm0, %v2129_v1  ;;  %1910 = vmatprep.mubr.msk.bf16.mxu1 %vm2130_vm0, %v2129_v1  ;;  %v295_v43 = vsel %vm294_vm1, %v292_v36, %v293_v15  ;;  %v296_v44 = vsel %vm294_vm1, %v291_v24, %v292_v36  ;;  %v552_v46 = vrot.slane %v2211_v10, 7  ;;  %v2289_v47 = vsel %vm276_vm3, %v272_v37, %v273_v18 }
  0x19   : > { %1933 = vmatpush3.bf16.msra.mxu1 %v2085_v31  ;;  %1946 = vmatprep.subr.bf16.mxu0 %v2129_v1  ;;  %v2293_v48 = vsel %vm276_vm3, %v271_v29, %v272_v37  ;;  %vm457_vm4 = vcmp.lt.s32.totalorder %v2191_v4, 5  ;;  %vm553_vm5 = vcmp.lt.s32.totalorder %v2191_v4, 1  ;;  %v303_v49 = vpack.c.bf16 %v295_v43, %v296_v44 }
  0x1a   : > { %1960 = vmatprep.subr.bf16.mxu1 %v2129_v1  ;;  %v548_v50 = vrot.slane %v2208_v9, 7  ;;  %vm827_vm6 = vcmp.lt.s32.totalorder %v2191_v4, 3  ;;  %vm923_vm7 = vcmp.lt.s32.totalorder %v2191_v4, 2  ;;  %v285_v51 = vpack.c.bf16 %v2289_v47, %v2293_v48  ;;  %v2089_v4 = vld [vmem:[%s2686_s1 + $0x30] sm:$0xff]  }
  0x1b   : > { %v462_v52 = vsel %vm457_vm4, %v451_v40, %v452_v41  ;;  %v463_v53 = vsel %vm457_vm4, %v456_v42, %v451_v40  ;;  %v2318_v54 = vsel %vm553_vm5, %v552_v46, %v547_v45  ;;  %v551_v55 = vrot.slane %v2229_v20, 7  ;;  %v2086_v40 = vld [vmem:[%s2686_s1 + $0x20] sm:$0xff]  }
  0x1c   : > { %v821_v56 = vrot.slane %v2205_v8, 5  ;;  %v822_v57 = vrot.slane %v2208_v9, 5  ;;  %v823_v58 = vrot.slane %v2214_v11, 5  ;;  %v917_v59 = vrot.slane %v2205_v8, 6 }
  0x1d   : > { %v918_v60 = vrot.slane %v2208_v9, 6  ;;  %v919_v61 = vrot.slane %v2214_v11, 6  ;;  %v824_v62 = vrot.slane %v2219_v12, 5  ;;  %v825_v2 = vrot.slane %v2229_v20, 5 }
  0x1e   : > { %1897 = vmatmul.mubr.msk.bf16.gmra.mxu0 %vm312_vm2, %v302_v38  ;;  %v2330_v63 = vsel %vm827_vm6, %v822_v57, %v823_v58  ;;  %v2334_v0 = vsel %vm827_vm6, %v821_v56, %v822_v57  ;;  %v920_v3 = vrot.slane %v2219_v12, 6  ;;  %v921_v18 = vrot.slane %v2229_v20, 6 }
  0x1f   : > { %1911 = vmatmul.mubr.msk.bf16.gmra.mxu1 %vm312_vm2, %v284_v39  ;;  %1900 = vmatprep.mubr.msk.bf16.mxu0 %vm2130_vm0, %v2129_v1  ;;  %v834_v8 = vpack.c.bf16 %v2330_v63, %v2334_v0  ;;  %v2342_v13 = vsel %vm923_vm7, %v918_v60, %v919_v61  ;;  %v2346_v14 = vsel %vm923_vm7, %v917_v59, %v918_v60  ;;  %v826_v23 = vrot.slane %v2211_v10, 5 }
  0x20   : > { %1914 = vmatprep.mubr.msk.bf16.mxu1 %vm2130_vm0, %v2129_v1  ;;  %v2350_v15 = vsel %vm827_vm6, %v823_v58, %v824_v62  ;;  %v930_v16 = vpack.c.bf16 %v2342_v13, %v2346_v14  ;;  %v2356_v17 = vsel %vm827_vm6, %v824_v62, %v825_v2  ;;  %v2361_v19 = vsel %vm923_vm7, %v919_v61, %v920_v3 }
  0x21   : > { %v2368_v21 = vsel %vm553_vm5, %v551_v55, %v552_v46  ;;  %v835_v22 = vpack.c.bf16 %v2356_v17, %v2350_v15  ;;  %v922_v24 = vrot.slane %v2211_v10, 6  ;;  %v2381_v25 = vsel %vm553_vm5, %v547_v45, %v548_v50 }
  0x22   : > { %v2385_v26 = vsel %vm923_vm7, %v920_v3, %v921_v18  ;;  %v1015_v29 = vpack.c.bf16 %v2318_v54, %v2368_v21  ;;  %v2395_v31 = vsel %vm827_vm6, %v825_v2, %v826_v23  ;;  %v2399_v32 = vsel %vm827_vm6, %v826_v23, %v821_v56 }
  0x23   : > { %v931_v30 = vpack.c.bf16 %v2385_v26, %v2361_v19  ;;  %v2403_v33 = vsel %vm923_vm7, %v921_v18, %v922_v24  ;;  %v836_v36 = vpack.c.bf16 %v2399_v32, %v2395_v31  ;;  %v2409_v37 = vsel %vm923_vm7, %v922_v24, %v917_v59 }
  0x24   : > { %v464_v38 = vpack.c.bf16 %v462_v52, %v463_v53  ;;  %v932_v39 = vpack.c.bf16 %v2409_v37, %v2403_v33  ;;  %v560_v43 = vpack.c.bf16 %v2381_v25, %v2318_v54  ;;  %v453_v44 = vrot.slane %v2214_v11, 3 }
  0x25   : > { %v454_v45 = vrot.slane %v2219_v12, 3  ;;  %v549_v46 = vrot.slane %v2214_v11, 7  ;;  %v455_v57 = vrot.slane %v2229_v20, 3  ;;  %v738_v10 = vpack.c.bf16 %v2270_v35, %v2242_v27  ;;  %v2092_v20 = vld [vmem:[%s2686_s1 + $0x38] sm:$0xff]   ;;  %v1098_v35 = vld [vmem:[%s2687_s2 + $0x10] sm:$0xff] }
  0x26   : > { %1901 = vmatmul.mubr.msk.bf16.gmra.mxu0 %vm312_vm2, %v303_v49  ;;  %v550_v49 = vrot.slane %v2219_v12, 7  ;;  %v461_v53 = vsel %vm457_vm4, %v452_v41, %v453_v44  ;;  %v739_v27 = vpack.c.bf16 %v2293_v48, %v2266_v34  ;;  %v1099_v34 = vld [vmem:[%s2687_s2 + $0x18] sm:$0xff] }
  0x27   : > { %1915 = vmatmul.mubr.msk.bf16.gmra.mxu1 %vm312_vm2, %v285_v51  ;;  %1920 = vmatprep.mubr.msk.bf16.mxu0 %vm2130_vm0, %v2129_v1  ;;  %v2087_v51 = vld [vmem:[%s2686_s1 + $0x28] sm:$0xff]   ;;  %v460_v52 = vsel %vm457_vm4, %v453_v44, %v454_v45  ;;  %v557_v12 = vsel %vm553_vm5, %v548_v50, %v549_v46  ;;  %v458_v9 = vsel %vm457_vm4, %v455_v57, %v456_v42  ;;  %v1096_v42 = vld [vmem:[%s2687_s2] sm:$0xff] }
  0x28   : > { %1934 = vmatprep.mubr.msk.bf16.mxu1 %vm2130_vm0, %v2129_v1  ;;  %v556_v11 = vsel %vm553_vm5, %v549_v46, %v550_v49  ;;  %v465_v56 = vpack.c.bf16 %v460_v52, %v461_v53  ;;  %v459_v50 = vsel %vm457_vm4, %v454_v45, %v455_v57  ;;  %v555_v58 = vsel %vm553_vm5, %v550_v49, %v551_v55 }
  0x29   : > { %v561_v41 = vpack.c.bf16 %v556_v11, %v557_v12  ;;  %v466_v59 = vpack.c.bf16 %v458_v9, %v459_v50  ;;  %v562_v60 = vpack.c.bf16 %v2368_v21, %v555_v58 }
  0x2e   : > { %1921 = vmatmul.mubr.msk.bf16.vlgmr.msra.gmra.mxu0 %vm312_vm2, %v464_v38 }
  0x2f   : > { %1947 = vmatpush3.bf16.msra.mxu0 %v2086_v40  ;;  %1935 = vmatmul.mubr.msk.bf16.vlgmr.msra.gmra.mxu1 %vm312_vm2, %v560_v43 }
  0x30   : > { %1924 = vmatprep.mubr.msk.bf16.mxu0 %vm2130_vm0, %v2129_v1  ;;  %1938 = vmatprep.mubr.msk.bf16.mxu1 %vm2130_vm0, %v2129_v1 }
  0x31   : > { %1961 = vmatpush3.bf16.msra.mxu1 %v2087_v51  ;;  %1974 = vmatprep.subr.bf16.mxu0 %v2129_v1 }
  0x32   : > { %1988 = vmatprep.subr.bf16.mxu1 %v2129_v1 }
  0x36   : > { %1925 = vmatmul.mubr.msk.bf16.gmra.mxu0 %vm312_vm2, %v465_v56 }
  0x37   : > { %1939 = vmatmul.mubr.msk.bf16.gmra.mxu1 %vm312_vm2, %v561_v41  ;;  %1928 = vmatprep.mubr.msk.bf16.mxu0 %vm2130_vm0, %v2129_v1 }
  0x38   : > { %1942 = vmatprep.mubr.msk.bf16.mxu1 %vm2130_vm0, %v2129_v1 }
  0x3e   : > { %1929 = vmatmul.mubr.msk.bf16.gmra.mxu0 %vm312_vm2, %v466_v59 }
  0x3f   : > { %1943 = vmatmul.mubr.msk.bf16.gmra.mxu1 %vm312_vm2, %v562_v60  ;;  %1948 = vmatprep.mubr.msk.bf16.mxu0 %vm2130_vm0, %v2129_v1 }
  0x40   : > { %1962 = vmatprep.mubr.msk.bf16.mxu1 %vm2130_vm0, %v2129_v1 }
  0x46   : > { %1949 = vmatmul.mubr.msk.bf16.vlgmr.msra.gmra.mxu0 %vm312_vm2, %v2198_v5  ;;  %v740_v5 = vpack.c.bf16 %v2246_v28, %v2289_v47  ;;  %v1014_v28 = vpack.c.bf16 %v555_v58, %v556_v11  ;;  %v2566_v47 = vld [vmem:[%s2688_s3] sm:$0xff] }
  0x47   : > { %1975 = vmatpush3.bf16.msra.mxu0 %v2089_v4  ;;  %1963 = vmatmul.mubr.msk.bf16.vlgmr.msra.gmra.mxu1 %vm312_vm2, %v738_v10 }
  0x48   : > { %1952 = vmatprep.mubr.msk.bf16.mxu0 %vm2130_vm0, %v2129_v1  ;;  %1966 = vmatprep.mubr.msk.bf16.mxu1 %vm2130_vm0, %v2129_v1 }
  0x49   : > { %1989 = vmatpush3.bf16.msra.mxu1 %v2092_v20  ;;  %2002 = vmatprep.subr.bf16.mxu0 %v2129_v1 }
  0x4a   : > { %2016 = vmatprep.subr.mxu1 %v1099_v34 }
  0x4e   : > { %1953 = vmatmul.mubr.msk.bf16.gmra.mxu0 %vm312_vm2, %v2202_v7  ;;  %v2093_v7 = vld [vmem:[%s2686_s1 + $0x40] sm:$0xff]  }
  0x4f   : > { %1967 = vmatmul.mubr.msk.bf16.gmra.mxu1 %vm312_vm2, %v739_v27  ;;  %1956 = vmatprep.mubr.msk.bf16.mxu0 %vm2130_vm0, %v2129_v1 }
  0x50   : > { %1970 = vmatprep.mubr.msk.bf16.mxu1 %vm2130_vm0, %v2129_v1 }
  0x56   : > { %1957 = vmatmul.mubr.msk.bf16.gmra.mxu0 %vm312_vm2, %v2200_v6  ;;  %v1013_v6 = vpack.c.bf16 %v557_v12, %v2381_v25 }
  0x57   : > { %1971 = vmatmul.mubr.msk.bf16.gmra.mxu1 %vm312_vm2, %v740_v5  ;;  %1976 = vmatprep.mubr.msk.bf16.mxu0 %vm2130_vm0, %v2129_v1 }
  0x58   : > { %1990 = vmatprep.mubr.msk.bf16.mxu1 %vm2130_vm0, %v2129_v1 }
  0x5e   : > { %1977 = vmatmul.mubr.msk.bf16.vlgmr.msra.gmra.mxu0 %vm312_vm2, %v834_v8 }
  0x5f   : > { %2003 = vmatpush3.bf16.msra.mxu0 %v2093_v7  ;;  %1991 = vmatmul.mubr.msk.bf16.vlgmr.msra.gmra.mxu1 %vm312_vm2, %v930_v16 }
  0x60   : > { %1980 = vmatprep.mubr.msk.bf16.mxu0 %vm2130_vm0, %v2129_v1  ;;  %1994 = vmatprep.mubr.msk.bf16.mxu1 %vm2130_vm0, %v2129_v1 }
  0x61   : > { %2044 = vmatprep.subr.mxu0 %v1099_v34  ;;  %2017 = vmatpush3.msra.mxu1 %v1099_v34 }
  0x62   : > { %2018 = vmatprep.subr.mxu1 %v1098_v35 }
  0x63   : > { %2019 = vmatpush3.msra.mxu1 %v1098_v35 }
  0x66   : > { %1981 = vmatmul.mubr.msk.bf16.gmra.mxu0 %vm312_vm2, %v835_v22 }
  0x67   : > { %1995 = vmatmul.mubr.msk.bf16.gmra.mxu1 %vm312_vm2, %v931_v30  ;;  %1984 = vmatprep.mubr.msk.bf16.mxu0 %vm2130_vm0, %v2129_v1 }
  0x68   : > { %1998 = vmatprep.mubr.msk.bf16.mxu1 %vm2130_vm0, %v2129_v1 }
  0x6e   : > { %1985 = vmatmul.mubr.msk.bf16.gmra.mxu0 %vm312_vm2, %v836_v36 }
  0x6f   : > { %1999 = vmatmul.mubr.msk.bf16.gmra.mxu1 %vm312_vm2, %v932_v39  ;;  %2004 = vmatprep.mubr.msk.bf16.mxu0 %vm2130_vm0, %v2129_v1 }
  0x76   : > { %2005 = vmatmul.mubr.msk.bf16.vlgmr.msra.gmra.mxu0 %vm312_vm2, %v1013_v6 }
  0x77   : > { %2008 = vmatprep.mubr.msk.bf16.mxu0 %vm2130_vm0, %v2129_v1  ;;  %2045 = vmatpush3.msra.mxu0 %v1099_v34 }
  0x78   : > { %2046 = vmatprep.subr.mxu0 %v1098_v35 }
  0x79   : > { %2047 = vmatpush3.msra.mxu0 %v1098_v35 }
  0x7e   : > { %2009 = vmatmul.mubr.msk.bf16.gmra.mxu0 %vm312_vm2, %v1014_v28 }
  0x7f   : > { %2012 = vmatprep.mubr.msk.bf16.mxu0 %vm2130_vm0, %v2129_v1  ;;  %v1097_v1 = vld [vmem:[%s2687_s2 + $0x8] sm:$0xff] }
  0x80   : > { %2020 = vmatprep.subr.mxu1 %v1097_v1  ;;  %2048 = vmatprep.subr.mxu0 %v1097_v1 }
  0x81   : > { %2021 = vmatpush3.msra.mxu1 %v1097_v1  ;;  %2049 = vmatpush3.msra.mxu0 %v1097_v1 }
  0x82   : > { %2022 = vmatprep.subr.mxu1 %v1096_v42  ;;  %2050 = vmatprep.subr.mxu0 %v1096_v42 }
  0x83   : > { %2023 = vmatpush3.msra.mxu1 %v1096_v42  ;;  %2051 = vmatpush3.msra.mxu0 %v1096_v42 }
  0x84   : > { %2033 = vmatprep.subr.mxu1 %v2566_v47 }
  0x86   : > { %2013 = vmatmul.mubr.msk.bf16.gmra.mxu0 %vm312_vm2, %v1015_v29 }
  0xd6   : > { %v356_v48 = vpop.f32.mrf.mxu0 }
  0xd7   : > { %v428_v54 = vpop.f32.mrf.mxu1 }
  0xd8   : > { %v2569_v55 = vadd.f32 %v428_v54, %v356_v48  ;;  %v1894_v61 = vpop.f32.mrf.mxu0 }
  0xd9   : > { %v1908_v62 = vpop.f32.mrf.mxu1 }
  0xda   : > { %v359_v63 = vpop.f32.mrf.mxu0 }
  0xdb   : > { %v431_v0 = vpop.f32.mrf.mxu1 }
  0xdc   : > { %v2571_v2 = vadd.f32 %v431_v0, %v359_v63  ;;  %v1895_v3 = vpop.f32.mrf.mxu0 }
  0xdd   : > { %v1909_v8 = vpop.f32.mrf.mxu1 }
  0xde   : > { %v364_v13 = vpop.f32.mrf.mxu0 }
  0xdf   : > { %v436_v14 = vpop.f32.mrf.mxu1 }
  0xe0   : > { %v2573_v15 = vadd.f32 %v436_v14, %v364_v13  ;;  %v1898_v16 = vpop.f32.mrf.mxu0 }
  0xe1   : > { %v1912_v17 = vpop.f32.mrf.mxu1 }
  0xe2   : > { %v367_v18 = vpop.f32.mrf.mxu0 }
  0xe3   : > { %v439_v19 = vpop.f32.mrf.mxu1 }
  0xe4   : > { %v2575_v21 = vadd.f32 %v439_v19, %v367_v18  ;;  %v1899_v22 = vpop.f32.mrf.mxu0 }
  0xe5   : > { %v1913_v23 = vpop.f32.mrf.mxu1 }
  0xe6   : > { %v372_v24 = vpop.f32.mrf.mxu0 }
  0xe7   : > { %v444_v25 = vpop.f32.mrf.mxu1 }
  0xe8   : > { %v2577_v26 = vadd.f32 %v444_v25, %v372_v24  ;;  %v1902_v29 = vpop.f32.mrf.mxu0 }
  0xe9   : > { %v1916_v30 = vpop.f32.mrf.mxu1 }
  0xea   : > { %v375_v31 = vpop.f32.mrf.mxu0 }
  0xeb   : > { %v447_v32 = vpop.f32.mrf.mxu1 }
  0xec   : > { %v2579_v33 = vadd.f32 %v447_v32, %v375_v31  ;;  %v1903_v36 = vpop.f32.mrf.mxu0 }
  0xed   : > { %v1917_v37 = vpop.f32.mrf.mxu1 }
  0xee   : > { %v518_v38 = vpop.f32.mrf.mxu0 }
  0xef   : > { %v614_v39 = vpop.f32.mrf.mxu1  ;;  %v541_v36 = vadd.f32 %v518_v38, %v2569_v55 }
  0xf0   : > { %v1922_v40 = vpop.f32.mrf.mxu0 }
  0xf1   : > { %v1936_v43 = vpop.f32.mrf.mxu1 }
  0xf2   : > { %v521_v44 = vpop.f32.mrf.mxu0 }
  0xf3   : > { %v617_v45 = vpop.f32.mrf.mxu1 }
  0xf4   : > { %v1923_v46 = vpop.f32.mrf.mxu0 }
  0xf5   : > { %v1937_v49 = vpop.f32.mrf.mxu1 }
  0xf6   : > { %v526_v51 = vpop.f32.mrf.mxu0  ;;  %v637_v49 = vadd.f32 %v614_v39, %v541_v36 }
  0xf7   : > { %v2581_v52 = vpop.f32.mrf.mxu1 }
  0xf8   : > { %v1926_v53 = vpop.f32.mrf.mxu0 }
  0xf9   : > { %v1940_v11 = vpop.f32.mrf.mxu1  ;;  %v542_v53 = vadd.f32 %v521_v44, %v2571_v2 }
  0xfa   : > { %v2583_v12 = vpop.f32.mrf.mxu0 }
  0xfb   : > { %v2585_v56 = vpop.f32.mrf.mxu1  ;;  %v544_v39 = vadd.f32 %v2583_v12, %v2575_v21 }
  0xfc   : > { %v1927_v41 = vpop.f32.mrf.mxu0 }
  0xfd   : > { %v1941_v57 = vpop.f32.mrf.mxu1 }
  0xfe   : > { %v2587_v9 = vpop.f32.mrf.mxu0 }
  0xff   : > { %v2589_v50 = vpop.f32.mrf.mxu1 }
 0x100   : > { %v1930_v58 = vpop.f32.mrf.mxu0 }
 0x101   : > { %v1944_v59 = vpop.f32.mrf.mxu1 }
 0x102   : > { %v2591_v60 = vpop.f32.mrf.mxu0 }
 0x103   : > { %v2593_v10 = vpop.f32.mrf.mxu1 }
 0x104   : > { %v1931_v4 = vpop.f32.mrf.mxu0 }
 0x105   : > { %v1945_v20 = vpop.f32.mrf.mxu1  ;;  %v638_v4 = vadd.f32 %v617_v45, %v542_v53 }
 0x106   : > { %v709_v27 = vpop.f32.mrf.mxu0  ;;  %v543_v20 = vadd.f32 %v526_v51, %v2573_v15  ;;  %v640_v15 = vadd.f32 %v2585_v56, %v544_v39  ;;  %v545_v51 = vadd.f32 %v2587_v9, %v2577_v26 }
 0x107   : > { %v792_v5 = vpop.f32.mrf.mxu1  ;;  %v732_v57 = vadd.f32 %v709_v27, %v637_v49 }
 0x108   : > { %v1950_v7 = vpop.f32.mrf.mxu0 }
 0x109   : > { %v1964_v6 = vpop.f32.mrf.mxu1 }
 0x10a   : > { %v712_v28 = vpop.f32.mrf.mxu0 }
 0x10b   : > { %v795_v34 = vpop.f32.mrf.mxu1 }
 0x10c   : > { %v1951_v35 = vpop.f32.mrf.mxu0 }
 0x10d   : > { %v1965_v1 = vpop.f32.mrf.mxu1  ;;  %v815_v35 = vadd.f32 %v792_v5, %v732_v57 }
 0x10e   : > { %v717_v42 = vpop.f32.mrf.mxu0  ;;  %v733_v1 = vadd.f32 %v712_v28, %v638_v4 }
 0x10f   : > { %v800_v48 = vpop.f32.mrf.mxu1 }
 0x110   : > { %v1954_v54 = vpop.f32.mrf.mxu0  ;;  %v816_v27 = vadd.f32 %v795_v34, %v733_v1  ;;  %v546_v34 = vadd.f32 %v2591_v60, %v2579_v33 }
 0x111   : > { %v1968_v61 = vpop.f32.mrf.mxu1  ;;  %v639_v54 = vadd.f32 %v2581_v52, %v543_v20 }
 0x112   : > { %v720_v62 = vpop.f32.mrf.mxu0 }
 0x113   : > { %v2595_v63 = vpop.f32.mrf.mxu1 }
 0x114   : > { %v1955_v0 = vpop.f32.mrf.mxu0 }
 0x115   : > { %v1969_v3 = vpop.f32.mrf.mxu1  ;;  %v734_v0 = vadd.f32 %v717_v42, %v639_v54 }
 0x116   : > { %v725_v8 = vpop.f32.mrf.mxu0 }
 0x117   : > { %v2597_v13 = vpop.f32.mrf.mxu1  ;;  %v817_v52 = vadd.f32 %v800_v48, %v734_v0  ;;  %v642_v48 = vadd.f32 %v2593_v10, %v546_v34 }
 0x118   : > { %v1958_v14 = vpop.f32.mrf.mxu0 }
 0x119   : > { %v1972_v16 = vpop.f32.mrf.mxu1 }
 0x11a   : > { %v2599_v17 = vpop.f32.mrf.mxu0 }
 0x11b   : > { %v2601_v18 = vpop.f32.mrf.mxu1  ;;  %v737_v60 = vadd.f32 %v2599_v17, %v642_v48 }
 0x11c   : > { %v1959_v19 = vpop.f32.mrf.mxu0 }
 0x11d   : > { %v1973_v22 = vpop.f32.mrf.mxu1  ;;  %v735_v19 = vadd.f32 %v720_v62, %v640_v15 }
 0x11e   : > { %v888_v23 = vpop.f32.mrf.mxu0  ;;  %v641_v22 = vadd.f32 %v2589_v50, %v545_v51 }
 0x11f   : > { %v984_v24 = vpop.f32.mrf.mxu1  ;;  %v911_v2 = vadd.f32 %v888_v23, %v815_v35  ;;  %v818_v26 = vadd.f32 %v2595_v63, %v735_v19 }
 0x120   : > { %v1978_v25 = vpop.f32.mrf.mxu0  ;;  %v736_v9 = vadd.f32 %v725_v8, %v641_v22 }
 0x121   : > { %v1992_v29 = vpop.f32.mrf.mxu1  ;;  %v1007_v5 = vadd.f32 %v984_v24, %v911_v2 }
 0x122   : > { %v891_v30 = vpop.f32.mrf.mxu0  ;;  %v819_v33 = vadd.f32 %v2597_v13, %v736_v9 }
 0x123   : > { %v987_v31 = vpop.f32.mrf.mxu1  ;;  %v912_v28 = vadd.f32 %v891_v30, %v816_v27 }
 0x124   : > { %v1979_v32 = vpop.f32.mrf.mxu0 }
 0x125   : > { %v1993_v37 = vpop.f32.mrf.mxu1  ;;  %v1008_v42 = vadd.f32 %v987_v31, %v912_v28  ;;  %v820_v32 = vadd.f32 %v2601_v18, %v737_v60 }
 0x126   : > { %v896_v40 = vpop.f32.mrf.mxu0 }
 0x127   : > { %v992_v43 = vpop.f32.mrf.mxu1  ;;  %v913_v23 = vadd.f32 %v896_v40, %v817_v52 }
 0x128   : > { %v1982_v46 = vpop.f32.mrf.mxu0 }
 0x129   : > { %v1996_v11 = vpop.f32.mrf.mxu1  ;;  %v1009_v62 = vadd.f32 %v992_v43, %v913_v23 }
 0x12a   : > { %v899_v41 = vpop.f32.mrf.mxu0 }
 0x12b   : > { %v995_v58 = vpop.f32.mrf.mxu1  ;;  %v914_v29 = vadd.f32 %v899_v41, %v818_v26 }
 0x12c   : > { %v1983_v59 = vpop.f32.mrf.mxu0 }
 0x12d   : > { %v1997_v7 = vpop.f32.mrf.mxu1  ;;  %v1010_v8 = vadd.f32 %v995_v58, %v914_v29 }
 0x12e   : > { %v904_v6 = vpop.f32.mrf.mxu0 }
 0x12f   : > { %v1000_v55 = vpop.f32.mrf.mxu1  ;;  %v915_v31 = vadd.f32 %v904_v6, %v819_v33 }
 0x130   : > { %v1986_v38 = vpop.f32.mrf.mxu0 }
 0x131   : > { %v2000_v44 = vpop.f32.mrf.mxu1  ;;  %v1011_v40 = vadd.f32 %v1000_v55, %v915_v31 }
 0x132   : > { %v907_v61 = vpop.f32.mrf.mxu0 }
 0x133   : > { %v1003_v3 = vpop.f32.mrf.mxu1  ;;  %v916_v43 = vadd.f32 %v907_v61, %v820_v32 }
 0x134   : > { %v1987_v45 = vpop.f32.mrf.mxu0 }
 0x135   : > { %v2001_v14 = vpop.f32.mrf.mxu1  ;;  %v1012_v49 = vadd.f32 %v1003_v3, %v916_v43 }
 0x136   : > { %v1067_v16 = vpop.f32.mrf.mxu0 }
 0x137   : > { %v1090_v21 = vadd.f32 %v1067_v16, %v1007_v5 }
 0x138   : > { %v2006_v12 = vpop.f32.mrf.mxu0 }
 0x139   : > { %2024 = vmatprep.mubr.msk.f32.mxu1 %vm1100_vm8, %v1090_v21 }
 0x13a   : > { %v1070_v56 = vpop.f32.mrf.mxu0 }
 0x13b   : > { %v1091_v24 = vadd.f32 %v1070_v56, %v1008_v42 }
 0x13c   : > { %v2007_v25 = vpop.f32.mrf.mxu0 }
 0x13d   : > { %2025 = vmatmul.mubr.msk.f32.vlgmr.msra.gmra.mxu1 %vm1100_vm8, %v1091_v24 }
 0x13e   : > { %v1075_v50 = vpop.f32.mrf.mxu0  ;;  %2034 = vmatpush3.msra.mxu1 %v2566_v47 }
 0x13f   : > { %v1092_v30 = vadd.f32 %v1075_v50, %v1009_v62  ;;  %2061 = vmatprep.subr.mxu1 %v2566_v47  ;;  %v1799_v50 = vld [vmem:[%s2690_s5] ss:$0 sm:$0xff] }
 0x140   : > { %v2010_v63 = vpop.f32.mrf.mxu0 }
 0x141   : > { %2027 = vmatprep.mubr.msk.f32.mxu1 %vm1100_vm8, %v1092_v30 }
 0x142   : > { %v1078_v10 = vpop.f32.mrf.mxu0 }
 0x143   : > { %v1093_v36 = vadd.f32 %v1078_v10, %v1010_v8 }
 0x144   : > { %v2011_v37 = vpop.f32.mrf.mxu0 }
 0x145   : > { %2028 = vmatmul.mubr.msk.f32.gmra.mxu1 %vm1100_vm8, %v1093_v36 }
 0x146   : > { %v1083_v13 = vpop.f32.mrf.mxu0 }
 0x147   : > { %v1094_v46 = vadd.f32 %v1083_v13, %v1011_v40 }
 0x148   : > { %v2014_v17 = vpop.f32.mrf.mxu0 }
 0x149   : > { %2030 = vmatprep.mubr.msk.f32.mxu1 %vm1100_vm8, %v1094_v46 }
 0x14a   : > { %v1086_v53 = vpop.f32.mrf.mxu0 }
 0x14b   : > { %v1095_v11 = vadd.f32 %v1086_v53, %v1012_v49 }
 0x14c   : > { %v2015_v41 = vpop.f32.mrf.mxu0 }
 0x14d   : > { %2031 = vmatmul.mubr.msk.f32.gmra.mxu1 %vm1100_vm8, %v1095_v11 }
 0x1fd   : > { %v2026_v57 = vpop.f32.mrf.mxu1 }
 0x1ff   : > { %v1185_v18 = vpop.f32.mrf.mxu1 }
 0x200   : > { %2035 = vmatprep.mubr.msk.f32.mxu1 %vm1215_vm9, %v1185_v18 }
 0x201   : > { %2036 = vmatmul.mubr.msk.f32.vlgmr.msra.gmra.mxu1 %vm1215_vm9, %v2026_v57 }
 0x202   : > { %2062 = vmatpush3.msra.mxu1 %v2566_v47 }
 0x205   : > { %v2029_v58 = vpop.f32.mrf.mxu1 }
 0x207   : > { %v1195_v59 = vpop.f32.mrf.mxu1 }
 0x208   : > { %2038 = vmatprep.mubr.msk.f32.mxu1 %vm1215_vm9, %v1195_v59 }
 0x209   : > { %2039 = vmatmul.mubr.msk.f32.gmra.mxu1 %vm1215_vm9, %v2029_v58 }
 0x20d   : > { %v2032_v4 = vpop.f32.mrf.mxu1 }
 0x20f   : > { %v1205_v20 = vpop.f32.mrf.mxu1 }
 0x210   : > { %2041 = vmatprep.mubr.msk.f32.mxu1 %vm1215_vm9, %v1205_v20 }
 0x211   : > { %2042 = vmatmul.mubr.msk.f32.gmra.mxu1 %vm1215_vm9, %v2032_v4 }
 0x2c1   : > { %v2037_v7 = vpop.f32.mrf.mxu1 }
 0x2c2   : > { %v1330_v6 = vsub.f32 %v1091_v24, %v2037_v7  ;;  %v1798_v24 = vld [vmem:[%s2689_s4] ss:$0 sm:$0xff] }
 0x2c3   : > { %v1300_v35 = vpop.f32.mrf.mxu1 }
 0x2c4   : > { %v1329_v1 = vsub.f32 %v1090_v21, %v1300_v35  ;;  %v1336_v38 = vmul.f32 %v1330_v6, %v1330_v6 }
 0x2c6   : > { %v1335_v55 = vmul.f32 %v1329_v1, %v1329_v1 }
 0x2c8   : > { %2052 = vmatprep.mubr.msk.f32.mxu0 %vm1100_vm8, %v1335_v55 }
 0x2c9   : > { %v2040_v47 = vpop.f32.mrf.mxu1  ;;  %2053 = vmatmul.mubr.msk.f32.vlgmr.msra.gmra.mxu0 %vm1100_vm8, %v1336_v38 }
 0x2ca   : > { %v1332_v54 = vsub.f32 %v1093_v36, %v2040_v47 }
 0x2cb   : > { %v1310_v39 = vpop.f32.mrf.mxu1 }
 0x2cc   : > { %v1331_v2 = vsub.f32 %v1092_v30, %v1310_v39  ;;  %v1338_v61 = vmul.f32 %v1332_v54, %v1332_v54 }
 0x2ce   : > { %v1337_v44 = vmul.f32 %v1331_v2, %v1331_v2 }
 0x2d0   : > { %2055 = vmatprep.mubr.msk.f32.mxu0 %vm1100_vm8, %v1337_v44 }
 0x2d1   : > { %v2043_v27 = vpop.f32.mrf.mxu1  ;;  %2056 = vmatmul.mubr.msk.f32.gmra.mxu0 %vm1100_vm8, %v1338_v61 }
 0x2d2   : > { %v2639_v0 = vsub.f32 %v1095_v11, %v2043_v27 }
 0x2d3   : > { %v1320_v3 = vpop.f32.mrf.mxu1 }
 0x2d4   : > { %v2641_v45 = vsub.f32 %v1094_v46, %v1320_v3  ;;  %v1340_v51 = vmul.f32 %v2639_v0, %v2639_v0 }
 0x2d6   : > { %v1339_v15 = vmul.f32 %v2641_v45, %v2641_v45 }
 0x2d8   : > { %2058 = vmatprep.mubr.msk.f32.mxu0 %vm1100_vm8, %v1339_v15 }
 0x2d9   : > { %2059 = vmatmul.mubr.msk.f32.gmra.mxu0 %vm1100_vm8, %v1340_v51 }
 0x389   : > { %v2054_v5 = vpop.f32.mrf.mxu0 }
 0x38b   : > { %v1425_v28 = vpop.f32.mrf.mxu0 }
 0x38c   : > { %2063 = vmatprep.mubr.msk.f32.mxu1 %vm1215_vm9, %v1425_v28 }
 0x38d   : > { %2064 = vmatmul.mubr.msk.f32.vlgmr.msra.gmra.mxu1 %vm1215_vm9, %v2054_v5 }
 0x391   : > { %v2057_v14 = vpop.f32.mrf.mxu0 }
 0x393   : > { %v1435_v16 = vpop.f32.mrf.mxu0 }
 0x394   : > { %2066 = vmatprep.mubr.msk.f32.mxu1 %vm1215_vm9, %v1435_v16 }
 0x395   : > { %2067 = vmatmul.mubr.msk.f32.gmra.mxu1 %vm1215_vm9, %v2057_v14 }
 0x399   : > { %v2060_v52 = vpop.f32.mrf.mxu0 }
 0x39b   : > { %v1445_v19 = vpop.f32.mrf.mxu0 }
 0x39c   : > { %2069 = vmatprep.mubr.msk.f32.mxu1 %vm1215_vm9, %v1445_v19 }
 0x39d   : > { %2070 = vmatmul.mubr.msk.f32.gmra.mxu1 %vm1215_vm9, %v2060_v52 }
 0x44d   : > { %v2065_v21 = vpop.f32.mrf.mxu1 }
 0x44e   : > { %v1544_v12 = vadd.f32 0.001, %v2065_v21 }
 0x44f   : > { %v1538_v22 = vpop.f32.mrf.mxu1 }
 0x450   : > { %2097 = vrsqrt.f32 %v1544_v12  ;;  %v1539_v34 = vadd.f32 0.001, %v1538_v22 }
 0x452   : > { %2099 = vrsqrt.f32 %v1539_v34 }
 0x455   : > { %v2068_v42 = vpop.f32.mrf.mxu1 }
 0x456   : > { %v1554_v23 = vadd.f32 0.001, %v2068_v42 }
 0x457   : > { %v1548_v56 = vpop.f32.mrf.mxu1 }
 0x458   : > { %2101 = vrsqrt.f32 %v1554_v23  ;;  %v1549_v26 = vadd.f32 0.001, %v1548_v56 }
 0x45a   : > { %2103 = vrsqrt.f32 %v1549_v26 }
 0x45d   : > { %v2098_v9 = vpop.eup %2097  ;;  %v2071_v25 = vpop.f32.mrf.mxu1 }
 0x45e   : > { %v1574_v48 = vmul.f32 %v2098_v9, %v1330_v6  ;;  %v1564_v62 = vadd.f32 0.001, %v2071_v25 }
 0x45f   : > { %v2100_v29 = vpop.eup %2099  ;;  %v1558_v33 = vpop.f32.mrf.mxu1 }
 0x460   : > { %v1587_v60 = vmul.f32 %v1798_v24, %v1574_v48  ;;  %v1573_v30 = vmul.f32 %v2100_v29, %v1329_v1  ;;  %2105 = vrsqrt.f32 %v1564_v62  ;;  %v1559_v63 = vadd.f32 0.001, %v1558_v33 }
 0x462   : > { %v1600_v8 = vadd.f32 %v1799_v50, %v1587_v60  ;;  %v1586_v31 = vmul.f32 %v1798_v24, %v1573_v30  ;;  %2107 = vrsqrt.f32 %v1559_v63 }
 0x464   : > { %v1612_v10 = vmin.f32 %v1600_v8, 0.0  ;;  %v1599_v32 = vadd.f32 %v1799_v50, %v1586_v31  ;;  %vm1606_vm10 = vcmp.gt.f32.partialorder %v1600_v8, 0.0 }
 0x465   : > { %v2102_v36 = vpop.eup %2101 }
 0x466   : > { %v1619_v37 = vmul.f32 1.442695, %v1612_v10  ;;  %v1611_v40 = vmin.f32 %v1599_v32, 0.0  ;;  %v1576_v43 = vmul.f32 %v2102_v36, %v1332_v54  ;;  %vm1605_vm12 = vcmp.gt.f32.partialorder %v1599_v32, 0.0 }
 0x467   : > { %v2104_v13 = vpop.eup %2103 }
 0x468   : > { %2109 = vpow2.f32 %v1619_v37  ;;  %v1617_v46 = vmul.f32 1.442695, %v1611_v40  ;;  %v1589_v17 = vmul.f32 %v1798_v24, %v1576_v43  ;;  %v1575_v49 = vmul.f32 %v2104_v13, %v1331_v2 }
 0x46a   : > { %2111 = vpow2.f32 %v1617_v46  ;;  %v1602_v53 = vadd.f32 %v1799_v50, %v1589_v17  ;;  %v1588_v11 = vmul.f32 %v1798_v24, %v1575_v49 }
 0x46c   : > { %v1614_v41 = vmin.f32 %v1602_v53, 0.0  ;;  %v1601_v57 = vadd.f32 %v1799_v50, %v1588_v11  ;;  %vm1608_vm13 = vcmp.gt.f32.partialorder %v1602_v53, 0.0 }
 0x46d   : > { %v2106_v18 = vpop.eup %2105 }
 0x46e   : > { %v1623_v58 = vmul.f32 1.442695, %v1614_v41  ;;  %v1613_v59 = vmin.f32 %v1601_v57, 0.0  ;;  %v1578_v4 = vmul.f32 %v2106_v18, %v2639_v0  ;;  %vm1607_vm14 = vcmp.gt.f32.partialorder %v1601_v57, 0.0 }
 0x46f   : > { %v2108_v20 = vpop.eup %2107 }
 0x470   : > { %2113 = vpow2.f32 %v1623_v58  ;;  %v1621_v7 = vmul.f32 1.442695, %v1613_v59  ;;  %v1591_v6 = vmul.f32 %v1798_v24, %v1578_v4  ;;  %v1577_v35 = vmul.f32 %v2108_v20, %v2641_v45 }
 0x472   : > { %2115 = vpow2.f32 %v1621_v7  ;;  %v1604_v1 = vadd.f32 %v1799_v50, %v1591_v6  ;;  %v1590_v55 = vmul.f32 %v1798_v24, %v1577_v35 }
 0x474   : > { %v1616_v38 = vmin.f32 %v1604_v1, 0.0  ;;  %v1603_v47 = vadd.f32 %v1799_v50, %v1590_v55  ;;  %vm1610_vm15 = vcmp.gt.f32.partialorder %v1604_v1, 0.0 }
 0x475   : > { %v2110_v54 = vpop.eup %2109 }
 0x476   : > { %v1801_v39 = vadd.f32 -1.0, %v2110_v54  ;;  %v1627_v2 = vmul.f32 1.442695, %v1616_v38  ;;  %v1615_v44 = vmin.f32 %v1603_v47, 0.0  ;;  %vm1609_vm0 = vcmp.gt.f32.partialorder %v1603_v47, 0.0 }
 0x477   : > { %v2112_v61 = vpop.eup %2111 }
 0x478   : > { %v1636_v27 = vsel %vm1606_vm10, %v1600_v8, %v1801_v39  ;;  %v1800_v0 = vadd.f32 -1.0, %v2112_v61  ;;  %2117 = vpow2.f32 %v1627_v2  ;;  %v1625_v3 = vmul.f32 1.442695, %v1615_v44 }
 0x479   : > { %v1815_v45 = vpack.c.bf16 %v1636_v27, %v1636_v27 }
 0x47a   : > { %v1635_v15 = vsel %vm1605_vm12, %v1599_v32, %v1800_v0  ;;  %2119 = vpow2.f32 %v1625_v3 }
 0x47b   : > { %1667 = vst.msk [vmem:[%s2668_s17 + $0x4] sm:$0xf] %vm1665_vm11, %v1815_v45  ;;  %v1814_v51 = vpack.c.bf16 %v1635_v15, %v1635_v15 }
 0x47d   : > { %v2114_v5 = vpop.eup %2113  ;;  %1666 = vst.msk [vmem:[%s2668_s17] sm:$0xf] %vm1665_vm11, %v1814_v51 }
 0x47e   : > { %v1803_v28 = vadd.f32 -1.0, %v2114_v5 }
 0x47f   : > { %v2116_v14 = vpop.eup %2115 }
 0x480   : > { %v1638_v16 = vsel %vm1608_vm13, %v1602_v53, %v1803_v28  ;;  %v1802_v52 = vadd.f32 -1.0, %v2116_v14 }
 0x481   : > { %v1817_v19 = vpack.c.bf16 %v1638_v16, %v1638_v16 }
 0x482   : > { %v1637_v21 = vsel %vm1607_vm14, %v1601_v57, %v1802_v52 }
 0x483   : > { %1669 = vst.msk [vmem:[%s2668_s17 + $0xc] sm:$0xf] %vm1665_vm11, %v1817_v19  ;;  %v1816_v12 = vpack.c.bf16 %v1637_v21, %v1637_v21 }
 0x485   : > { %v2118_v22 = vpop.eup %2117  ;;  %1668 = vst.msk [vmem:[%s2668_s17 + $0x8] sm:$0xf] %vm1665_vm11, %v1816_v12 }
 0x486   : > { %v1805_v34 = vadd.f32 -1.0, %v2118_v22 }
 0x487   : > { %v2120_v42 = vpop.eup %2119 }
 0x488   : > { %v1640_v23 = vsel %vm1610_vm15, %v1604_v1, %v1805_v34  ;;  %v1804_v56 = vadd.f32 -1.0, %v2120_v42 }
 0x489   : > { %v1819_v26 = vpack.c.bf16 %v1640_v23, %v1640_v23 }
 0x48a   : > { %v1639_v9 = vsel %vm1609_vm0, %v1603_v47, %v1804_v56 }
 0x48b   : > { %1671 = vst.msk [vmem:[%s2668_s17 + $0x14] sm:$0xf] %vm1665_vm11, %v1819_v26  ;;  %v1818_v24 = vpack.c.bf16 %v1639_v9, %v1639_v9 }
 0x48d   : > { %1670 = vst.msk [vmem:[%s2668_s17 + $0x10] sm:$0xf] %vm1665_vm11, %v1818_v24 }
 0x48e PF: > { %s16_s21 = sadd.s32 1, %s2127_s21  }
 0x48f   : > { %p13_p4 = scmp.ge.s32.totalorder %s16_s21, 4  }
 0x491   :  { %15 = sbr.rel (!%p13_p4) target bundleno = 1 (0x1), region = 74 }

// kernel: _lambda_.5
= control target key start
LH: loop header
LB: loop body
LE: loop exit
PB: predicated region body
PF: predicated region fallthrough
CT: control target
= control target key end

     0   :  { %s2166_s12 = smov 0   ;;  %s3053_s0 = inlined_call_operand.vmem [shape: bf16[224,8], index: 0, kind: input, shape index: {}]   ;;  %s3054_s1 = inlined_call_operand.vmem [shape: bf16[72,12], index: 1, kind: input, shape index: {}]   ;;  %s3055_s2 = inlined_call_operand.vmem [shape: f32[1,12], index: 2, kind: input, shape index: {}]   ;;  %s3056_s3 = inlined_call_operand.vmem [shape: f32[224,12], index: 3, kind: output, shape index: {}]  }
   0x1 LB: > { %s1688_s13 = sadd.s32 4294967295, %s2142_s12   ;;  %p1692_p0 = scmp.ge.s32.totalorder %s2142_s12, 1  ;;  %s2142_s12 = sphi %s2166_s12, %s13_s12  }
   0x2   : > { %p138_p1 = scmp.lt.s32.totalorder %s2142_s12, 3 }
   0x4   : > { %p139_p2 = pnand %p1692_p0, %p138_p1 }
   0x5   : > { %s162_s16 = smul.u32 (!%p139_p2), 14, %s1688_s13 }
   0x6   : > { %142 = sbr.rel (%p139_p2) target bundleno = 472 (0x1d8), region = 32 }
   0x7   : > { %p163_p3 = scmp.lt.s32.totalorder (!%p139_p2), %s162_s16, 27 }
   0xb   : > { %v278_v0 = vld [vmem:[%s3054_s1 + $0x4] sm:$0xf]  ;;  %vm301_vm0 = vcmask 1043456   ;;  %v217_v1 = vlaneseq  ;;  %v2144_v2 = vmov 0.0   ;;  %vm2145_vm1 = vmmov 0   ;;  %s3058_s16 = smov (!%p163_p3, %s162_s16), 27 }
   0xc   : > { %1840 = vmatprep.subr.bf16.mxu0 %v2144_v2  ;;  %2110 = vmatprep.subr.bf16.mxu1 %v2144_v2  ;;  %v303_v3 = vsel %vm301_vm0, %v278_v0, 0  ;;  %s1693_s17 = sshll.u32 %s3058_s16, 2  ;;  %vm279_vm3 = vcmask 64512   ;;  %v543_v23 = vld [vmem:[%s3054_s1 + $0x8] sm:$0xf]  ;;  %s1694_s10 = sshll.u32 %s3058_s16, 3 }
   0xd   : > { %1841 = vmatpush3.bf16.msra.mxu0 %v303_v3  ;;  %2111 = vmatpush3.bf16.msra.mxu1 %v303_v3  ;;  %v2187_v4 = vshrl.u32 %v217_v1, 7  ;;  %s2194_s20 = scalar_lea.vmem %s3053_s0, %s1693_s17  ;;  %v241_v26 = vld [vmem:[%s3054_s1] sm:$0xf]  ;;  %v566_v36 = vsel %vm301_vm0, %v543_v23, 0  ;;  %v678_v23 = vld [vmem:[%s3054_s1 + $0xc] sm:$0xf]  ;;  %s2970_s17 = scalar_lea.vmem %s3056_s3, %s1694_s10 }
   0xe   : > { %1842 = vmatprep.mubr.msk.bf16.mxu0 %vm2145_vm1, %v2144_v2  ;;  %1858 = vmatprep.mubr.msk.bf16.mxu1 %vm2145_vm1, %v2144_v2  ;;  %v2197_v5 = vld [vmem:[%s2194_s20] sm:$0xff]   ;;  %v2200_v6 = vld [vmem:[%s2194_s20 + $0x30] sm:$0xff]   ;;  %v2204_v7 = vld [vmem:[%s2194_s20 + $0x18] sm:$0xff]   ;;  %v416_v39 = vsel %vm301_vm0, %v241_v26, 0  ;;  %vm1617_vm9 = vcmask 97280  }
   0xf   : > { %1900 = vmatprep.subr.bf16.mxu0 %v2144_v2  ;;  %1870 = vmatprep.subr.bf16.mxu1 %v2144_v2  ;;  %vm256_vm2 = vcmp.lt.s32.totalorder %v2187_v4, 2  ;;  %v2207_v8 = vunpack.c.l.bf16 %v2197_v5  ;;  %v2210_v9 = vunpack.c.l.bf16 %v2200_v6  ;;  %v2213_v10 = vunpack.c.h.bf16 %v2200_v6  ;;  %v2216_v11 = vld [vmem:[%s2194_s20 + $0x20] sm:$0xff]   ;;  %v2222_v13 = vld [vmem:[%s2194_s20 + $0x8] sm:$0xff]   ;;  %v2269_v37 = vld [vmem:[%s2194_s20 + $0x10] sm:$0xff]  }
  0x10   : > { %v2219_v12 = vunpack.c.l.bf16 %v2204_v7  ;;  %v2225_v14 = vunpack.c.h.bf16 %v2204_v7  ;;  %v2228_v15 = vunpack.c.l.bf16 %v2216_v11  ;;  %v2231_v16 = vunpack.c.h.bf16 %v2197_v5  ;;  %v2237_v18 = vld [vmem:[%s2194_s20 + $0x28] sm:$0xff]  }
  0x11   : > { %v2234_v17 = vunpack.c.l.bf16 %v2222_v13  ;;  %v242_v19 = vrot.slane %v2207_v8, 6  ;;  %v254_v20 = vrot.slane %v2210_v9, 6  ;;  %v255_v21 = vrot.slane %v2213_v10, 6 }
  0x12   : > { %v248_v22 = vrot.slane %v2219_v12, 6  ;;  %v249_v24 = vrot.slane %v2225_v14, 6  ;;  %v250_v25 = vrot.slane %v2228_v15, 6  ;;  %v243_v27 = vrot.slane %v2231_v16, 6 }
  0x13   : > { %v244_v28 = vrot.slane %v2234_v17, 6  ;;  %v257_v29 = vsel %vm256_vm2, %v254_v20, %v255_v21  ;;  %v270_v30 = vsel %vm256_vm2, %v255_v21, %v242_v19  ;;  %v2258_v31 = vunpack.c.h.bf16 %v2216_v11 }
  0x14   : > { %v2261_v32 = vunpack.c.l.bf16 %v2237_v18  ;;  %v271_v33 = vpack.c.bf16 %v270_v30, %v257_v29  ;;  %v262_v34 = vsel %vm256_vm2, %v249_v24, %v250_v25  ;;  %v263_v35 = vsel %vm256_vm2, %v248_v22, %v249_v24 }
  0x15   : > { %v275_v38 = vpack.c.bf16 %v262_v34, %v263_v35  ;;  %v251_v40 = vrot.slane %v2258_v31, 6  ;;  %v268_v42 = vsel %vm256_vm2, %v243_v27, %v244_v28  ;;  %v269_v43 = vsel %vm256_vm2, %v242_v19, %v243_v27 }
  0x16   : > { %v252_v41 = vrot.slane %v2261_v32, 6  ;;  %1843 = vmatmul.mubr.msk.bf16.vlgmr.msra.gmra.mxu0 %vm279_vm3, %v271_v33  ;;  %v2281_v44 = vunpack.c.h.bf16 %v2222_v13  ;;  %v2284_v45 = vunpack.c.l.bf16 %v2269_v37  ;;  %v2293_v48 = vunpack.c.h.bf16 %v2237_v18 }
  0x17   : > { %1859 = vmatmul.mubr.msk.bf16.vlgmr.msra.gmra.mxu1 %vm279_vm3, %v275_v38  ;;  %1901 = vmatpush3.bf16.msra.mxu0 %v566_v36  ;;  %v261_v47 = vsel %vm256_vm2, %v250_v25, %v251_v40  ;;  %v272_v49 = vpack.c.bf16 %v268_v42, %v269_v43  ;;  %v2311_v56 = vunpack.c.h.bf16 %v2269_v37  ;;  %v203_v62 = vrot.slane %v2207_v8, 5  ;;  %v806_v36 = vld [vmem:[%s3054_s1 + $0x10] sm:$0xf] }
  0x18   : > { %1871 = vmatpush3.bf16.msra.mxu1 %v416_v39  ;;  %1846 = vmatprep.mubr.msk.bf16.mxu0 %vm2145_vm1, %v2144_v2  ;;  %v260_v46 = vsel %vm256_vm2, %v251_v40, %v252_v41  ;;  %v245_v51 = vrot.slane %v2281_v44, 6  ;;  %v246_v52 = vrot.slane %v2284_v45, 6  ;;  %v253_v53 = vrot.slane %v2293_v48, 6 }
  0x19   : > { %1862 = vmatprep.mubr.msk.bf16.mxu1 %vm2145_vm1, %v2144_v2  ;;  %1930 = vmatprep.subr.bf16.mxu1 %v2144_v2  ;;  %v276_v50 = vpack.c.bf16 %v260_v46, %v261_v47  ;;  %v247_v61 = vrot.slane %v2311_v56, 6  ;;  %v215_v63 = vrot.slane %v2210_v9, 5  ;;  %v216_v0 = vrot.slane %v2213_v10, 5 }
  0x1a   : > { %1960 = vmatprep.subr.bf16.mxu0 %v2144_v2  ;;  %v266_v54 = vsel %vm256_vm2, %v245_v51, %v246_v52  ;;  %v267_v55 = vsel %vm256_vm2, %v244_v28, %v245_v51  ;;  %v258_v57 = vsel %vm256_vm2, %v253_v53, %v254_v20  ;;  %v259_v58 = vsel %vm256_vm2, %v252_v41, %v253_v53 }
  0x1b   : > { %v273_v59 = vpack.c.bf16 %v266_v54, %v267_v55  ;;  %v277_v60 = vpack.c.bf16 %v258_v57, %v259_v58  ;;  %vm219_vm4 = vcmp.lt.s32.totalorder %v2187_v4, 3  ;;  %v264_v1 = vsel %vm256_vm2, %v247_v61, %v248_v22 }
  0x1c   : > { %v265_v3 = vsel %vm256_vm2, %v246_v52, %v247_v61  ;;  %v220_v19 = vsel %vm219_vm4, %v215_v63, %v216_v0  ;;  %v233_v20 = vsel %vm219_vm4, %v216_v0, %v203_v62  ;;  %v507_v24 = vrot.slane %v2207_v8, 7 }
  0x1d   : > { %v274_v21 = vpack.c.bf16 %v264_v1, %v265_v3  ;;  %v234_v22 = vpack.c.bf16 %v233_v20, %v220_v19  ;;  %v519_v25 = vrot.slane %v2210_v9, 7  ;;  %v520_v26 = vrot.slane %v2213_v10, 7 }
  0x1e   : > { %1847 = vmatmul.mubr.msk.bf16.gmra.mxu0 %vm279_vm3, %v272_v49  ;;  %v204_v27 = vrot.slane %v2231_v16, 5  ;;  %v205_v28 = vrot.slane %v2234_v17, 5  ;;  %vm521_vm5 = vcmp.lt.s32.totalorder %v2187_v4, 1  ;;  %v701_v29 = vsel %vm301_vm0, %v678_v23, 0 }
  0x1f   : > { %1863 = vmatmul.mubr.msk.bf16.gmra.mxu1 %vm279_vm3, %v276_v50  ;;  %1850 = vmatprep.mubr.msk.bf16.mxu0 %vm2145_vm1, %v2144_v2  ;;  %v2358_v30 = vsel %vm521_vm5, %v519_v25, %v520_v26  ;;  %v2362_v33 = vsel %vm521_vm5, %v520_v26, %v507_v24  ;;  %v508_v40 = vrot.slane %v2231_v16, 7  ;;  %v509_v41 = vrot.slane %v2234_v17, 7 }
  0x20   : > { %1866 = vmatprep.mubr.msk.bf16.mxu1 %vm2145_vm1, %v2144_v2  ;;  %v231_v34 = vsel %vm219_vm4, %v204_v27, %v205_v28  ;;  %v232_v35 = vsel %vm219_vm4, %v203_v62, %v204_v27  ;;  %v536_v38 = vpack.c.bf16 %v2362_v33, %v2358_v30  ;;  %v864_v42 = vsel %vm301_vm0, %v806_v36, 0 }
  0x21   : > { %v235_v39 = vpack.c.bf16 %v231_v34, %v232_v35  ;;  %v206_v43 = vrot.slane %v2281_v44, 5  ;;  %v207_v46 = vrot.slane %v2284_v45, 5  ;;  %v2385_v47 = vsel %vm521_vm5, %v508_v40, %v509_v41 }
  0x22   : > { %v2389_v49 = vsel %vm521_vm5, %v507_v24, %v508_v40  ;;  %v510_v54 = vrot.slane %v2281_v44, 7  ;;  %v511_v55 = vrot.slane %v2284_v45, 7  ;;  %v208_v57 = vrot.slane %v2311_v56, 5 }
  0x23   : > { %v229_v50 = vsel %vm219_vm4, %v206_v43, %v207_v46  ;;  %v230_v51 = vsel %vm219_vm4, %v205_v28, %v206_v43  ;;  %v537_v52 = vpack.c.bf16 %v2385_v47, %v2389_v49  ;;  %v209_v58 = vrot.slane %v2219_v12, 5 }
  0x24   : > { %v236_v53 = vpack.c.bf16 %v229_v50, %v230_v51  ;;  %v228_v62 = vsel %vm219_vm4, %v207_v46, %v208_v57  ;;  %v512_v3 = vrot.slane %v2311_v56, 7  ;;  %v513_v19 = vrot.slane %v2219_v12, 7 }
  0x25   : > { %v227_v61 = vsel %vm219_vm4, %v208_v57, %v209_v58  ;;  %v210_v20 = vrot.slane %v2225_v14, 5  ;;  %v515_v34 = vrot.slane %v2228_v15, 7  ;;  %v212_v35 = vrot.slane %v2258_v31, 5 }
  0x26   : > { %1851 = vmatmul.mubr.msk.bf16.gmra.mxu0 %vm279_vm3, %v273_v59  ;;  %v2412_v59 = vsel %vm521_vm5, %v510_v54, %v511_v55  ;;  %v237_v1 = vpack.c.bf16 %v227_v61, %v228_v62  ;;  %v2436_v23 = vsel %vm521_vm5, %v512_v3, %v513_v19  ;;  %v213_v36 = vrot.slane %v2261_v32, 5 }
  0x27   : > { %1867 = vmatmul.mubr.msk.bf16.gmra.mxu1 %vm279_vm3, %v277_v60  ;;  %1854 = vmatprep.mubr.msk.bf16.mxu0 %vm2145_vm1, %v2144_v2  ;;  %v2416_v60 = vsel %vm521_vm5, %v509_v41, %v510_v54  ;;  %v226_v26 = vsel %vm219_vm4, %v209_v58, %v210_v20  ;;  %v516_v46 = vrot.slane %v2258_v31, 7  ;;  %v517_v50 = vrot.slane %v2261_v32, 7 }
  0x28   : > { %1872 = vmatprep.mubr.msk.bf16.mxu1 %vm2145_vm1, %v2144_v2  ;;  %v538_v0 = vpack.c.bf16 %v2412_v59, %v2416_v60  ;;  %v223_v40 = vsel %vm219_vm4, %v212_v35, %v213_v36  ;;  %v214_v51 = vrot.slane %v2293_v48, 5  ;;  %v518_v61 = vrot.slane %v2293_v48, 7 }
  0x29   : > { %vm983_vm6 = vcmp.lt.s32.totalorder %v2187_v4, 7  ;;  %vm1282_vm7 = vcmp.lt.s32.totalorder %v2187_v4, 6  ;;  %vm1446_vm8 = vcmp.lt.s32.totalorder %v2187_v4, 5 }
  0x2a   : > { %v221_v54 = vsel %vm219_vm4, %v214_v51, %v215_v63  ;;  %v523_v62 = vsel %vm521_vm5, %v518_v61, %v519_v25  ;;  %v524_v63 = vsel %vm521_vm5, %v517_v50, %v518_v61  ;;  %v1140_v25 = vld [vmem:[%s3054_s1 + $0x18] sm:$0xf] }
  0x2e   : > { %1855 = vmatmul.mubr.msk.bf16.gmra.mxu0 %vm279_vm3, %v274_v21  ;;  %v211_v21 = vrot.slane %v2228_v15, 5 }
  0x2f   : > { %1873 = vmatmul.mubr.msk.bf16.vlgmr.msra.gmra.mxu1 %vm279_vm3, %v234_v22  ;;  %1902 = vmatprep.mubr.msk.bf16.mxu0 %vm2145_vm1, %v2144_v2  ;;  %v530_v22 = vsel %vm521_vm5, %v511_v55, %v512_v3  ;;  %v222_v55 = vsel %vm219_vm4, %v213_v36, %v214_v51  ;;  %v671_v3 = vpack.c.bf16 %v2389_v49, %v2362_v33  ;;  %v1163_v49 = vsel %vm301_vm0, %v1140_v25, 0 }
  0x30   : > { %1931 = vmatpush3.bf16.msra.mxu1 %v701_v29  ;;  %1876 = vmatprep.mubr.msk.bf16.mxu1 %vm2145_vm1, %v2144_v2  ;;  %v225_v24 = vsel %vm219_vm4, %v210_v20, %v211_v21  ;;  %v539_v27 = vpack.c.bf16 %v2436_v23, %v530_v22  ;;  %v514_v29 = vrot.slane %v2225_v14, 7  ;;  %v224_v41 = vsel %vm219_vm4, %v211_v21, %v212_v35 }
  0x31   : > { %1990 = vmatprep.subr.bf16.mxu1 %v2144_v2  ;;  %v238_v28 = vpack.c.bf16 %v225_v24, %v226_v26  ;;  %v239_v43 = vpack.c.bf16 %v223_v40, %v224_v41  ;;  %v240_v58 = vpack.c.bf16 %v221_v54, %v222_v55  ;;  %v672_v33 = vpack.c.bf16 %v2416_v60, %v2385_v47 }
  0x32   : > { %v673_v20 = vpack.c.bf16 %v530_v22, %v2412_v59  ;;  %v969_v47 = vrot.slane %v2207_v8, 1  ;;  %v970_v59 = vrot.slane %v2231_v16, 1  ;;  %v971_v60 = vrot.slane %v2234_v17, 1 }
  0x33   : > { %v973_v22 = vrot.slane %v2284_v45, 1  ;;  %v975_v36 = vrot.slane %v2219_v12, 1  ;;  %v979_v54 = vrot.slane %v2261_v32, 1  ;;  %v982_v25 = vrot.slane %v2213_v10, 1 }
  0x36   : > { %1903 = vmatmul.mubr.msk.bf16.vlgmr.msra.gmra.mxu0 %vm279_vm3, %v536_v38  ;;  %v527_v38 = vsel %vm521_vm5, %v514_v29, %v515_v34 }
  0x37   : > { %1877 = vmatmul.mubr.msk.bf16.gmra.mxu1 %vm279_vm3, %v235_v39  ;;  %1961 = vmatpush3.bf16.msra.mxu0 %v864_v42  ;;  %v528_v39 = vsel %vm521_vm5, %v513_v19, %v514_v29 }
  0x38   : > { %1880 = vmatprep.mubr.msk.bf16.mxu1 %vm2145_vm1, %v2144_v2  ;;  %1906 = vmatprep.mubr.msk.bf16.mxu0 %vm2145_vm1, %v2144_v2  ;;  %v540_v42 = vpack.c.bf16 %v527_v38, %v528_v39 }
  0x39   : > { %2020 = vmatprep.subr.bf16.mxu0 %v2144_v2 }
  0x3e   : > { %1907 = vmatmul.mubr.msk.bf16.gmra.mxu0 %vm279_vm3, %v537_v52  ;;  %v525_v52 = vsel %vm521_vm5, %v516_v46, %v517_v50 }
  0x3f   : > { %1881 = vmatmul.mubr.msk.bf16.gmra.mxu1 %vm279_vm3, %v236_v53  ;;  %1910 = vmatprep.mubr.msk.bf16.mxu0 %vm2145_vm1, %v2144_v2  ;;  %v526_v53 = vsel %vm521_vm5, %v515_v34, %v516_v46  ;;  %v974_v34 = vrot.slane %v2311_v56, 1 }
  0x40   : > { %1884 = vmatprep.mubr.msk.bf16.mxu1 %vm2145_vm1, %v2144_v2  ;;  %v541_v57 = vpack.c.bf16 %v525_v52, %v526_v53 }
  0x46   : > { %1911 = vmatmul.mubr.msk.bf16.gmra.mxu0 %vm279_vm3, %v538_v0  ;;  %v542_v0 = vpack.c.bf16 %v523_v62, %v524_v63 }
  0x47   : > { %1885 = vmatmul.mubr.msk.bf16.gmra.mxu1 %vm279_vm3, %v237_v1  ;;  %1914 = vmatprep.mubr.msk.bf16.mxu0 %vm2145_vm1, %v2144_v2  ;;  %v1005_v1 = vld [vmem:[%s3054_s1 + $0x14] sm:$0xf] }
  0x48   : > { %1888 = vmatprep.mubr.msk.bf16.mxu1 %vm2145_vm1, %v2144_v2  ;;  %v1028_v19 = vsel %vm301_vm0, %v1005_v1, 0 }
  0x4e   : > { %1915 = vmatmul.mubr.msk.bf16.gmra.mxu0 %vm279_vm3, %v539_v27 }
  0x4f   : > { %1889 = vmatmul.mubr.msk.bf16.gmra.mxu1 %vm279_vm3, %v238_v28  ;;  %1918 = vmatprep.mubr.msk.bf16.mxu0 %vm2145_vm1, %v2144_v2  ;;  %v1468_v28 = vld [vmem:[%s3054_s1 + $0x20] sm:$0xf] }
  0x50   : > { %1892 = vmatprep.mubr.msk.bf16.mxu1 %vm2145_vm1, %v2144_v2  ;;  %v1491_v35 = vsel %vm301_vm0, %v1468_v28, 0 }
  0x56   : > { %1919 = vmatmul.mubr.msk.bf16.gmra.mxu0 %vm279_vm3, %v540_v42  ;;  %v976_v42 = vrot.slane %v2225_v14, 1 }
  0x57   : > { %1893 = vmatmul.mubr.msk.bf16.gmra.mxu1 %vm279_vm3, %v239_v43  ;;  %1922 = vmatprep.mubr.msk.bf16.mxu0 %vm2145_vm1, %v2144_v2  ;;  %v977_v43 = vrot.slane %v2228_v15, 1 }
  0x58   : > { %1896 = vmatprep.mubr.msk.bf16.mxu1 %vm2145_vm1, %v2144_v2  ;;  %v990_v46 = vsel %vm983_vm6, %v975_v36, %v976_v42 }
  0x59   : > { %v989_v50 = vsel %vm983_vm6, %v976_v42, %v977_v43  ;;  %v1274_v42 = vrot.slane %v2219_v12, 2 }
  0x5e   : > { %1923 = vmatmul.mubr.msk.bf16.gmra.mxu0 %vm279_vm3, %v541_v57 }
  0x5f   : > { %1897 = vmatmul.mubr.msk.bf16.gmra.mxu1 %vm279_vm3, %v240_v58  ;;  %1926 = vmatprep.mubr.msk.bf16.mxu0 %vm2145_vm1, %v2144_v2 }
  0x60   : > { %1932 = vmatprep.mubr.msk.bf16.mxu1 %vm2145_vm1, %v2144_v2 }
  0x66   : > { %1927 = vmatmul.mubr.msk.bf16.gmra.mxu0 %vm279_vm3, %v542_v0 }
  0x67   : > { %1933 = vmatmul.mubr.msk.bf16.vlgmr.msra.gmra.mxu1 %vm279_vm3, %v671_v3  ;;  %1962 = vmatprep.mubr.msk.bf16.mxu0 %vm2145_vm1, %v2144_v2 }
  0x68   : > { %1991 = vmatpush3.bf16.msra.mxu1 %v1028_v19  ;;  %1936 = vmatprep.mubr.msk.bf16.mxu1 %vm2145_vm1, %v2144_v2 }
  0x69   : > { %2050 = vmatprep.subr.bf16.mxu1 %v2144_v2 }
  0x6e   : > { %1963 = vmatmul.mubr.msk.bf16.vlgmr.msra.gmra.mxu0 %vm279_vm3, %v2197_v5  ;;  %v674_v5 = vpack.c.bf16 %v528_v39, %v2436_v23  ;;  %v972_v23 = vrot.slane %v2281_v44, 1  ;;  %v991_v39 = vsel %vm983_vm6, %v974_v34, %v975_v36 }
  0x6f   : > { %1937 = vmatmul.mubr.msk.bf16.gmra.mxu1 %vm279_vm3, %v672_v33  ;;  %2021 = vmatpush3.bf16.msra.mxu0 %v1163_v49  ;;  %v1135_v51 = vpack.c.bf16 %v990_v46, %v991_v39  ;;  %v997_v49 = vsel %vm983_vm6, %v982_v25, %v969_v47 }
  0x70   : > { %1940 = vmatprep.mubr.msk.bf16.mxu1 %vm2145_vm1, %v2144_v2  ;;  %1966 = vmatprep.mubr.msk.bf16.mxu0 %vm2145_vm1, %v2144_v2  ;;  %v994_v26 = vsel %vm983_vm6, %v971_v60, %v972_v23  ;;  %v993_v27 = vsel %vm983_vm6, %v972_v23, %v973_v22  ;;  %v1435_v23 = vrot.slane %v2281_v44, 3 }
  0x71   : > { %2080 = vmatprep.subr.bf16.mxu0 %v2144_v2  ;;  %v999_v29 = vpack.c.bf16 %v993_v27, %v994_v26 }
  0x76   : > { %1967 = vmatmul.mubr.msk.bf16.gmra.mxu0 %vm279_vm3, %v2222_v13  ;;  %v675_v13 = vpack.c.bf16 %v526_v53, %v527_v38  ;;  %v992_v38 = vsel %vm983_vm6, %v973_v22, %v974_v34  ;;  %v978_v53 = vrot.slane %v2258_v31, 1  ;;  %v1272_v22 = vrot.slane %v2284_v45, 2 }
  0x77   : > { %1941 = vmatmul.mubr.msk.bf16.gmra.mxu1 %vm279_vm3, %v673_v20  ;;  %1970 = vmatprep.mubr.msk.bf16.mxu0 %vm2145_vm1, %v2144_v2  ;;  %v1134_v40 = vpack.c.bf16 %v992_v38, %v993_v27  ;;  %v1000_v41 = vpack.c.bf16 %v991_v39, %v992_v38  ;;  %v1436_v39 = vrot.slane %v2284_v45, 3 }
  0x78   : > { %1944 = vmatprep.mubr.msk.bf16.mxu1 %vm2145_vm1, %v2144_v2  ;;  %v988_v55 = vsel %vm983_vm6, %v977_v43, %v978_v53  ;;  %v987_v57 = vsel %vm983_vm6, %v978_v53, %v979_v54  ;;  %v1275_v43 = vrot.slane %v2225_v14, 2 }
  0x79   : > { %v1136_v58 = vpack.c.bf16 %v988_v55, %v989_v50  ;;  %v1002_v61 = vpack.c.bf16 %v987_v57, %v988_v55 }
  0x7a   : > { %v1289_v53 = vsel %vm1282_vm7, %v1274_v42, %v1275_v43 }
  0x7e   : > { %1971 = vmatmul.mubr.msk.bf16.gmra.mxu0 %vm279_vm3, %v2269_v37  ;;  %v676_v37 = vpack.c.bf16 %v524_v63, %v525_v52  ;;  %v1001_v52 = vpack.c.bf16 %v989_v50, %v990_v46  ;;  %v981_v63 = vrot.slane %v2210_v9, 1 }
  0x7f   : > { %1945 = vmatmul.mubr.msk.bf16.gmra.mxu1 %vm279_vm3, %v674_v5  ;;  %1974 = vmatprep.mubr.msk.bf16.mxu0 %vm2145_vm1, %v2144_v2 }
  0x80   : > { %1948 = vmatprep.mubr.msk.bf16.mxu1 %vm2145_vm1, %v2144_v2  ;;  %v984_v33 = vsel %vm983_vm6, %v981_v63, %v982_v25 }
  0x81   : > { %v1004_v5 = vpack.c.bf16 %v997_v49, %v984_v33 }
  0x86   : > { %1975 = vmatmul.mubr.msk.bf16.gmra.mxu0 %vm279_vm3, %v2204_v7  ;;  %v677_v7 = vpack.c.bf16 %v2358_v30, %v523_v62  ;;  %v2572_v30 = vsel %vm983_vm6, %v969_v47, %v970_v59  ;;  %v980_v62 = vrot.slane %v2293_v48, 1 }
  0x87   : > { %1949 = vmatmul.mubr.msk.bf16.gmra.mxu1 %vm279_vm3, %v675_v13  ;;  %1978 = vmatprep.mubr.msk.bf16.mxu0 %vm2145_vm1, %v2144_v2  ;;  %v1269_v13 = vrot.slane %v2231_v16, 2 }
  0x88   : > { %1952 = vmatprep.mubr.msk.bf16.mxu1 %vm2145_vm1, %v2144_v2  ;;  %v986_v0 = vsel %vm983_vm6, %v979_v54, %v980_v62  ;;  %v985_v1 = vsel %vm983_vm6, %v980_v62, %v981_v63  ;;  %v1438_v63 = vrot.slane %v2219_v12, 3 }
  0x89   : > { %v1137_v3 = vpack.c.bf16 %v986_v0, %v987_v57  ;;  %v1003_v19 = vpack.c.bf16 %v985_v1, %v986_v0  ;;  %v1138_v20 = vpack.c.bf16 %v984_v33, %v985_v1  ;;  %v1439_v0 = vrot.slane %v2225_v14, 3 }
  0x8b   : > { %v1453_v12 = vsel %vm1446_vm8, %v1438_v63, %v1439_v0 }
  0x8e   : > { %1979 = vmatmul.mubr.msk.bf16.gmra.mxu0 %vm279_vm3, %v2216_v11  ;;  %v995_v11 = vsel %vm983_vm6, %v970_v59, %v971_v60  ;;  %v1139_v60 = vpack.c.bf16 %v2572_v30, %v997_v49 }
  0x8f   : > { %1953 = vmatmul.mubr.msk.bf16.gmra.mxu1 %vm279_vm3, %v676_v37  ;;  %1982 = vmatprep.mubr.msk.bf16.mxu0 %vm2145_vm1, %v2144_v2  ;;  %v998_v21 = vpack.c.bf16 %v995_v11, %v2572_v30  ;;  %v1270_v37 = vrot.slane %v2234_v17, 2 }
  0x90   : > { %1956 = vmatprep.mubr.msk.bf16.mxu1 %vm2145_vm1, %v2144_v2 }
  0x91   : > { %v1294_v59 = vsel %vm1282_vm7, %v1269_v13, %v1270_v37 }
  0x96   : > { %1983 = vmatmul.mubr.msk.bf16.gmra.mxu0 %vm279_vm3, %v2237_v18  ;;  %v1304_v18 = vld [vmem:[%s3054_s1 + $0x1c] sm:$0xf] }
  0x97   : > { %1957 = vmatmul.mubr.msk.bf16.gmra.mxu1 %vm279_vm3, %v677_v7  ;;  %1986 = vmatprep.mubr.msk.bf16.mxu0 %vm2145_vm1, %v2144_v2  ;;  %v1327_v24 = vsel %vm301_vm0, %v1304_v18, 0  ;;  %v1271_v7 = vrot.slane %v2281_v44, 2  ;;  %v1433_v18 = vrot.slane %v2231_v16, 3 }
  0x98   : > { %1992 = vmatprep.mubr.msk.bf16.mxu1 %vm2145_vm1, %v2144_v2 }
  0x99   : > { %v1293_v47 = vsel %vm1282_vm7, %v1270_v37, %v1271_v7 }
  0x9e   : > { %1987 = vmatmul.mubr.msk.bf16.gmra.mxu0 %vm279_vm3, %v2200_v6  ;;  %v1133_v6 = vpack.c.bf16 %v994_v26, %v995_v11  ;;  %v1297_v11 = vpack.c.bf16 %v1293_v47, %v1294_v59 }
  0x9f   : > { %1993 = vmatmul.mubr.msk.bf16.vlgmr.msra.gmra.mxu1 %vm279_vm3, %v998_v21  ;;  %2022 = vmatprep.mubr.msk.bf16.mxu0 %vm2145_vm1, %v2144_v2  ;;  %v1434_v21 = vrot.slane %v2234_v17, 3 }
  0xa0   : > { %2051 = vmatpush3.bf16.msra.mxu1 %v1327_v24  ;;  %1996 = vmatprep.mubr.msk.bf16.mxu1 %vm2145_vm1, %v2144_v2  ;;  %v1273_v24 = vrot.slane %v2311_v56, 2 }
  0xa1   : > { %v1457_v17 = vsel %vm1446_vm8, %v1434_v21, %v1435_v23  ;;  %v1458_v44 = vsel %vm1446_vm8, %v1433_v18, %v1434_v21  ;;  %v1440_v21 = vrot.slane %v2228_v15, 3 }
  0xa2   : > { %v1291_v28 = vsel %vm1282_vm7, %v1272_v22, %v1273_v24  ;;  %v1290_v54 = vsel %vm1282_vm7, %v1273_v24, %v1274_v42  ;;  %v1278_v24 = vrot.slane %v2261_v32, 2 }
  0xa3   : > { %v1299_v62 = vpack.c.bf16 %v1289_v53, %v1290_v54  ;;  %v1281_v53 = vrot.slane %v2213_v10, 2 }
  0xa6   : > { %2023 = vmatmul.mubr.msk.bf16.vlgmr.msra.gmra.mxu0 %vm279_vm3, %v1133_v6  ;;  %v1292_v6 = vsel %vm1282_vm7, %v1271_v7, %v1272_v22 }
  0xa7   : > { %1997 = vmatmul.mubr.msk.bf16.gmra.mxu1 %vm279_vm3, %v999_v29  ;;  %2081 = vmatpush3.bf16.msra.mxu0 %v1491_v35  ;;  %v1461_v35 = vpack.c.bf16 %v1457_v17, %v1458_v44  ;;  %v1298_v38 = vpack.c.bf16 %v1291_v28, %v1292_v6  ;;  %v1279_v17 = vrot.slane %v2293_v48, 2 }
  0xa8   : > { %2000 = vmatprep.mubr.msk.bf16.mxu1 %vm2145_vm1, %v2144_v2  ;;  %2026 = vmatprep.mubr.msk.bf16.mxu0 %vm2145_vm1, %v2144_v2 }
  0xae   : > { %2027 = vmatmul.mubr.msk.bf16.gmra.mxu0 %vm279_vm3, %v1134_v40  ;;  %v1437_v40 = vrot.slane %v2311_v56, 3  ;;  %v1456_v56 = vsel %vm1446_vm8, %v1435_v23, %v1436_v39  ;;  %v1441_v23 = vrot.slane %v2258_v31, 3 }
  0xaf   : > { %2001 = vmatmul.mubr.msk.bf16.gmra.mxu1 %vm279_vm3, %v1000_v41  ;;  %2030 = vmatprep.mubr.msk.bf16.mxu0 %vm2145_vm1, %v2144_v2 }
  0xb0   : > { %2004 = vmatprep.mubr.msk.bf16.mxu1 %vm2145_vm1, %v2144_v2  ;;  %v1455_v45 = vsel %vm1446_vm8, %v1436_v39, %v1437_v40  ;;  %v1454_v14 = vsel %vm1446_vm8, %v1437_v40, %v1438_v63 }
  0xb1   : > { %v1463_v59 = vpack.c.bf16 %v1453_v12, %v1454_v14 }
  0xb6   : > { %2031 = vmatmul.mubr.msk.bf16.gmra.mxu0 %vm279_vm3, %v1135_v51 }
  0xb7   : > { %2005 = vmatmul.mubr.msk.bf16.gmra.mxu1 %vm279_vm3, %v1001_v52  ;;  %2034 = vmatprep.mubr.msk.bf16.mxu0 %vm2145_vm1, %v2144_v2 }
  0xb8   : > { %2008 = vmatprep.mubr.msk.bf16.mxu1 %vm2145_vm1, %v2144_v2 }
  0xbe   : > { %2035 = vmatmul.mubr.msk.bf16.gmra.mxu0 %vm279_vm3, %v1136_v58  ;;  %v1462_v58 = vpack.c.bf16 %v1455_v45, %v1456_v56 }
  0xbf   : > { %2009 = vmatmul.mubr.msk.bf16.gmra.mxu1 %vm279_vm3, %v1002_v61  ;;  %2038 = vmatprep.mubr.msk.bf16.mxu0 %vm2145_vm1, %v2144_v2 }
  0xc0   : > { %2012 = vmatprep.mubr.msk.bf16.mxu1 %vm2145_vm1, %v2144_v2 }
  0xc6   : > { %2039 = vmatmul.mubr.msk.bf16.gmra.mxu0 %vm279_vm3, %v1137_v3  ;;  %v1276_v3 = vrot.slane %v2228_v15, 2  ;;  %v1451_v15 = vsel %vm1446_vm8, %v1440_v21, %v1441_v23 }
  0xc7   : > { %2013 = vmatmul.mubr.msk.bf16.gmra.mxu1 %vm279_vm3, %v1003_v19  ;;  %2042 = vmatprep.mubr.msk.bf16.mxu0 %vm2145_vm1, %v2144_v2  ;;  %v1277_v19 = vrot.slane %v2258_v31, 2  ;;  %v1452_v31 = vsel %vm1446_vm8, %v1439_v0, %v1440_v21 }
  0xc8   : > { %2016 = vmatprep.mubr.msk.bf16.mxu1 %vm2145_vm1, %v2144_v2  ;;  %v1288_v37 = vsel %vm1282_vm7, %v1275_v43, %v1276_v3 }
  0xce   : > { %2043 = vmatmul.mubr.msk.bf16.gmra.mxu0 %vm279_vm3, %v1138_v20 }
  0xcf   : > { %2017 = vmatmul.mubr.msk.bf16.gmra.mxu1 %vm279_vm3, %v1004_v5  ;;  %2046 = vmatprep.mubr.msk.bf16.mxu0 %vm2145_vm1, %v2144_v2  ;;  %v1287_v5 = vsel %vm1282_vm7, %v1276_v3, %v1277_v19 }
  0xd0   : > { %2052 = vmatprep.mubr.msk.bf16.mxu1 %vm2145_vm1, %v2144_v2 }
  0xd6   : > { %v2680_v26 = vpop.f32.mrf.mxu0  ;;  %2047 = vmatmul.mubr.msk.bf16.gmra.mxu0 %vm279_vm3, %v1139_v60 }
  0xd7   : > { %v2683_v27 = vpop.f32.mrf.mxu1  ;;  %2053 = vmatmul.mubr.msk.bf16.vlgmr.msra.gmra.mxu1 %vm279_vm3, %v1297_v11  ;;  %2082 = vmatprep.mubr.msk.bf16.mxu0 %vm2145_vm1, %v2144_v2  ;;  %v1300_v11 = vpack.c.bf16 %v1287_v5, %v1288_v37  ;;  %v1444_v5 = vrot.slane %v2210_v9, 3 }
  0xd8   : > { %v1844_v30 = vpop.f32.mrf.mxu0  ;;  %2056 = vmatprep.mubr.msk.bf16.mxu1 %vm2145_vm1, %v2144_v2 }
  0xd9   : > { %v1860_v29 = vpop.f32.mrf.mxu1 }
  0xda   : > { %v2700_v34 = vpop.f32.mrf.mxu0 }
  0xdb   : > { %v2702_v36 = vpop.f32.mrf.mxu1 }
  0xdc   : > { %v1845_v41 = vpop.f32.mrf.mxu0 }
  0xdd   : > { %v1861_v46 = vpop.f32.mrf.mxu1  ;;  %v1464_v41 = vpack.c.bf16 %v1451_v15, %v1452_v31 }
  0xde   : > { %v2708_v50 = vpop.f32.mrf.mxu0  ;;  %2083 = vmatmul.mubr.msk.bf16.vlgmr.msra.gmra.mxu0 %vm279_vm3, %v1461_v35  ;;  %v1285_v35 = vsel %vm1282_vm7, %v1278_v24, %v1279_v17  ;;  %v1442_v46 = vrot.slane %v2261_v32, 3 }
  0xdf   : > { %v2711_v51 = vpop.f32.mrf.mxu1  ;;  %2057 = vmatmul.mubr.msk.bf16.gmra.mxu1 %vm279_vm3, %v1298_v38  ;;  %2086 = vmatprep.mubr.msk.bf16.mxu0 %vm2145_vm1, %v2144_v2  ;;  %v1286_v38 = vsel %vm1282_vm7, %v1277_v19, %v1278_v24 }
  0xe0   : > { %v1848_v52 = vpop.f32.mrf.mxu0  ;;  %2060 = vmatprep.mubr.msk.bf16.mxu1 %vm2145_vm1, %v2144_v2  ;;  %v1301_v43 = vpack.c.bf16 %v1285_v35, %v1286_v38 }
  0xe1   : > { %v1864_v55 = vpop.f32.mrf.mxu1  ;;  %v1280_v52 = vrot.slane %v2210_v9, 2 }
  0xe2   : > { %v2726_v57 = vpop.f32.mrf.mxu0 }
  0xe3   : > { %v2728_v61 = vpop.f32.mrf.mxu1  ;;  %v1283_v0 = vsel %vm1282_vm7, %v1280_v52, %v1281_v53 }
  0xe4   : > { %v1849_v1 = vpop.f32.mrf.mxu0 }
  0xe5   : > { %v1865_v25 = vpop.f32.mrf.mxu1  ;;  %v1284_v1 = vsel %vm1282_vm7, %v1279_v17, %v1280_v52 }
  0xe6   : > { %v2734_v33 = vpop.f32.mrf.mxu0  ;;  %2087 = vmatmul.mubr.msk.bf16.gmra.mxu0 %vm279_vm3, %v1462_v58 }
  0xe7   : > { %v2737_v49 = vpop.f32.mrf.mxu1  ;;  %2061 = vmatmul.mubr.msk.bf16.gmra.mxu1 %vm279_vm3, %v1299_v62  ;;  %2090 = vmatprep.mubr.msk.bf16.mxu0 %vm2145_vm1, %v2144_v2 }
  0xe8   : > { %v1852_v20 = vpop.f32.mrf.mxu0  ;;  %2064 = vmatprep.mubr.msk.bf16.mxu1 %vm2145_vm1, %v2144_v2 }
  0xe9   : > { %v1868_v7 = vpop.f32.mrf.mxu1  ;;  %v1302_v20 = vpack.c.bf16 %v1283_v0, %v1284_v1 }
  0xea   : > { %v2752_v47 = vpop.f32.mrf.mxu0 }
  0xeb   : > { %v2754_v60 = vpop.f32.mrf.mxu1 }
  0xec   : > { %v1853_v22 = vpop.f32.mrf.mxu0 }
  0xed   : > { %v1869_v44 = vpop.f32.mrf.mxu1 }
  0xee   : > { %v2760_v30 = vpop.f32.mrf.mxu0  ;;  %2091 = vmatmul.mubr.msk.bf16.gmra.mxu0 %vm279_vm3, %v1463_v59  ;;  %v1268_v59 = vrot.slane %v2207_v8, 2 }
  0xef   : > { %v452_v28 = vpop.f32.mrf.mxu1  ;;  %2065 = vmatmul.mubr.msk.bf16.gmra.mxu1 %vm279_vm3, %v1300_v11  ;;  %2094 = vmatprep.mubr.msk.bf16.mxu0 %vm2145_vm1, %v2144_v2 }
  0xf0   : > { %v453_v6 = vadd.f32 %v452_v28, %v2680_v26  ;;  %v1856_v29 = vpop.f32.mrf.mxu0  ;;  %2068 = vmatprep.mubr.msk.bf16.mxu1 %vm2145_vm1, %v2144_v2  ;;  %v1443_v26 = vrot.slane %v2293_v48, 3  ;;  %v1450_v48 = vsel %vm1446_vm8, %v1441_v23, %v1442_v46  ;;  %v1295_v17 = vsel %vm1282_vm7, %v1268_v59, %v1269_v13 }
  0xf1   : > { %v1874_v39 = vpop.f32.mrf.mxu1  ;;  %v1296_v44 = vsel %vm1282_vm7, %v1281_v53, %v1268_v59 }
  0xf2   : > { %v2777_v40 = vpop.f32.mrf.mxu0  ;;  %v1449_v32 = vsel %vm1446_vm8, %v1442_v46, %v1443_v26  ;;  %v1303_v35 = vpack.c.bf16 %v1295_v17, %v1296_v44 }
  0xf3   : > { %v455_v42 = vpop.f32.mrf.mxu1  ;;  %v1465_v25 = vpack.c.bf16 %v1449_v32, %v1450_v48 }
  0xf4   : > { %v456_v45 = vadd.f32 %v455_v42, %v2700_v34  ;;  %v1857_v56 = vpop.f32.mrf.mxu0 }
  0xf5   : > { %v1875_v54 = vpop.f32.mrf.mxu1 }
  0xf6   : > { %v602_v55 = vpop.f32.mrf.mxu0  ;;  %2095 = vmatmul.mubr.msk.bf16.gmra.mxu0 %vm279_vm3, %v1464_v41 }
  0xf7   : > { %v460_v58 = vpop.f32.mrf.mxu1  ;;  %v2785_v62 = vadd.f32 %v602_v55, %v453_v6  ;;  %2069 = vmatmul.mubr.msk.bf16.gmra.mxu1 %vm279_vm3, %v1301_v43  ;;  %2098 = vmatprep.mubr.msk.bf16.mxu0 %vm2145_vm1, %v2144_v2 }
  0xf8   : > { %v461_v34 = vadd.f32 %v460_v58, %v2708_v50  ;;  %v1904_v63 = vpop.f32.mrf.mxu0  ;;  %2072 = vmatprep.mubr.msk.bf16.mxu1 %vm2145_vm1, %v2144_v2  ;;  %v1445_v50 = vrot.slane %v2213_v10, 3  ;;  %v1448_v10 = vsel %vm1446_vm8, %v1443_v26, %v1444_v5 }
  0xf9   : > { %v1878_v3 = vpop.f32.mrf.mxu1 }
  0xfa   : > { %v605_v19 = vpop.f32.mrf.mxu0  ;;  %v1447_v9 = vsel %vm1446_vm8, %v1444_v5, %v1445_v50 }
  0xfb   : > { %v463_v12 = vpop.f32.mrf.mxu1  ;;  %v2801_v14 = vadd.f32 %v605_v19, %v456_v45  ;;  %v1466_v31 = vpack.c.bf16 %v1447_v9, %v1448_v10 }
  0xfc   : > { %v464_v37 = vadd.f32 %v463_v12, %v2726_v57  ;;  %v1905_v7 = vpop.f32.mrf.mxu0 }
  0xfd   : > { %v1879_v11 = vpop.f32.mrf.mxu1 }
  0xfe   : > { %v610_v21 = vpop.f32.mrf.mxu0  ;;  %2099 = vmatmul.mubr.msk.bf16.gmra.mxu0 %vm279_vm3, %v1465_v25 }
  0xff   : > { %v468_v23 = vpop.f32.mrf.mxu1  ;;  %v2808_v22 = vadd.f32 %v610_v21, %v461_v34  ;;  %2073 = vmatmul.mubr.msk.bf16.gmra.mxu1 %vm279_vm3, %v1302_v20  ;;  %2102 = vmatprep.mubr.msk.bf16.mxu0 %vm2145_vm1, %v2144_v2 }
 0x100   : > { %v469_v57 = vadd.f32 %v468_v23, %v2734_v33  ;;  %v1908_v24 = vpop.f32.mrf.mxu0  ;;  %2076 = vmatprep.mubr.msk.bf16.mxu1 %vm2145_vm1, %v2144_v2  ;;  %v1432_v33 = vrot.slane %v2207_v8, 3 }
 0x101   : > { %v1882_v28 = vpop.f32.mrf.mxu1 }
 0x102   : > { %v613_v15 = vpop.f32.mrf.mxu0  ;;  %v1459_v8 = vsel %vm1446_vm8, %v1432_v33, %v1433_v18 }
 0x103   : > { %v471_v6 = vpop.f32.mrf.mxu1  ;;  %v2826_v29 = vadd.f32 %v613_v15, %v464_v37 }
 0x104   : > { %v472_v38 = vadd.f32 %v471_v6, %v2752_v47  ;;  %v1909_v39 = vpop.f32.mrf.mxu0  ;;  %v1460_v47 = vsel %vm1446_vm8, %v1445_v50, %v1432_v33 }
 0x105   : > { %v1883_v41 = vpop.f32.mrf.mxu1  ;;  %v1467_v52 = vpack.c.bf16 %v1459_v8, %v1460_v47 }
 0x106   : > { %v618_v42 = vpop.f32.mrf.mxu0  ;;  %2103 = vmatmul.mubr.msk.bf16.gmra.mxu0 %vm279_vm3, %v1466_v31 }
 0x107   : > { %v476_v13 = vpop.f32.mrf.mxu1  ;;  %v2831_v43 = vadd.f32 %v618_v42, %v469_v57  ;;  %2077 = vmatmul.mubr.msk.bf16.gmra.mxu1 %vm279_vm3, %v1303_v35  ;;  %2106 = vmatprep.mubr.msk.bf16.mxu0 %vm2145_vm1, %v2144_v2 }
 0x108   : > { %v477_v46 = vadd.f32 %v476_v13, %v2760_v30  ;;  %v1912_v26 = vpop.f32.mrf.mxu0 }
 0x109   : > { %v1886_v45 = vpop.f32.mrf.mxu1 }
 0x10a   : > { %v621_v56 = vpop.f32.mrf.mxu0 }
 0x10b   : > { %v479_v53 = vpop.f32.mrf.mxu1  ;;  %v2843_v54 = vadd.f32 %v621_v56, %v472_v38 }
 0x10c   : > { %v480_v55 = vadd.f32 %v479_v53, %v2777_v40  ;;  %v1913_v2 = vpop.f32.mrf.mxu0 }
 0x10d   : > { %v1887_v58 = vpop.f32.mrf.mxu1 }
 0x10e   : > { %v626_v16 = vpop.f32.mrf.mxu0  ;;  %2107 = vmatmul.mubr.msk.bf16.gmra.mxu0 %vm279_vm3, %v1467_v52 }
 0x10f   : > { %v484_v18 = vpop.f32.mrf.mxu1  ;;  %v2847_v32 = vadd.f32 %v626_v16, %v477_v46 }
 0x110   : > { %v485_v4 = vadd.f32 %v484_v18, %v2683_v27  ;;  %v1916_v30 = vpop.f32.mrf.mxu0 }
 0x111   : > { %v1890_v48 = vpop.f32.mrf.mxu1 }
 0x112   : > { %v629_v34 = vpop.f32.mrf.mxu0 }
 0x113   : > { %v487_v63 = vpop.f32.mrf.mxu1  ;;  %v2850_v0 = vadd.f32 %v629_v34, %v480_v55 }
 0x114   : > { %v488_v1 = vadd.f32 %v487_v63, %v2702_v36  ;;  %v1917_v3 = vpop.f32.mrf.mxu0 }
 0x115   : > { %v1891_v40 = vpop.f32.mrf.mxu1 }
 0x116   : > { %v634_v19 = vpop.f32.mrf.mxu0 }
 0x117   : > { %v492_v25 = vpop.f32.mrf.mxu1  ;;  %v2853_v12 = vadd.f32 %v634_v19, %v485_v4 }
 0x118   : > { %v493_v20 = vadd.f32 %v492_v25, %v2711_v51  ;;  %v1920_v5 = vpop.f32.mrf.mxu0 }
 0x119   : > { %v1894_v50 = vpop.f32.mrf.mxu1 }
 0x11a   : > { %v637_v37 = vpop.f32.mrf.mxu0 }
 0x11b   : > { %v495_v27 = vpop.f32.mrf.mxu1  ;;  %v2856_v7 = vadd.f32 %v637_v37, %v488_v1 }
 0x11c   : > { %v496_v59 = vadd.f32 %v495_v27, %v2728_v61  ;;  %v1921_v11 = vpop.f32.mrf.mxu0 }
 0x11d   : > { %v1895_v21 = vpop.f32.mrf.mxu1 }
 0x11e   : > { %v642_v23 = vpop.f32.mrf.mxu0 }
 0x11f   : > { %v500_v36 = vpop.f32.mrf.mxu1  ;;  %v2859_v9 = vadd.f32 %v642_v23, %v493_v20 }
 0x120   : > { %v501_v10 = vadd.f32 %v500_v36, %v2737_v49  ;;  %v1924_v57 = vpop.f32.mrf.mxu0 }
 0x121   : > { %v1898_v24 = vpop.f32.mrf.mxu1 }
 0x122   : > { %v645_v17 = vpop.f32.mrf.mxu0 }
 0x123   : > { %v503_v51 = vpop.f32.mrf.mxu1  ;;  %v2862_v44 = vadd.f32 %v645_v17, %v496_v59 }
 0x124   : > { %v504_v28 = vadd.f32 %v503_v51, %v2754_v60  ;;  %v1925_v15 = vpop.f32.mrf.mxu0 }
 0x125   : > { %v1899_v31 = vpop.f32.mrf.mxu1 }
 0x126   : > { %v650_v6 = vpop.f32.mrf.mxu0 }
 0x127   : > { %v2865_v61 = vadd.f32 %v650_v6, %v501_v10  ;;  %v737_v35 = vpop.f32.mrf.mxu1 }
 0x128   : > { %v792_v33 = vadd.f32 %v737_v35, %v2785_v62  ;;  %v1928_v38 = vpop.f32.mrf.mxu0 }
 0x129   : > { %v1934_v39 = vpop.f32.mrf.mxu1 }
 0x12a   : > { %v653_v41 = vpop.f32.mrf.mxu0 }
 0x12b   : > { %v2868_v49 = vadd.f32 %v653_v41, %v504_v28  ;;  %v740_v42 = vpop.f32.mrf.mxu1 }
 0x12c   : > { %v793_v13 = vadd.f32 %v740_v42, %v2801_v14  ;;  %v1929_v8 = vpop.f32.mrf.mxu0 }
 0x12d   : > { %v1935_v47 = vpop.f32.mrf.mxu1 }
 0x12e   : > { %v900_v46 = vpop.f32.mrf.mxu0 }
 0x12f   : > { %v745_v60 = vpop.f32.mrf.mxu1  ;;  %v2871_v26 = vadd.f32 %v900_v46, %v792_v33 }
 0x130   : > { %v794_v45 = vadd.f32 %v745_v60, %v2808_v22  ;;  %v1964_v56 = vpop.f32.mrf.mxu0 }
 0x131   : > { %v1938_v52 = vpop.f32.mrf.mxu1 }
 0x132   : > { %v903_v53 = vpop.f32.mrf.mxu0 }
 0x133   : > { %v748_v62 = vpop.f32.mrf.mxu1  ;;  %v2874_v55 = vadd.f32 %v903_v53, %v793_v13 }
 0x134   : > { %v795_v2 = vadd.f32 %v748_v62, %v2826_v29  ;;  %v1965_v58 = vpop.f32.mrf.mxu0 }
 0x135   : > { %v1939_v16 = vpop.f32.mrf.mxu1 }
 0x136   : > { %v908_v18 = vpop.f32.mrf.mxu0 }
 0x137   : > { %v753_v14 = vpop.f32.mrf.mxu1  ;;  %v2877_v4 = vadd.f32 %v908_v18, %v794_v45 }
 0x138   : > { %v796_v30 = vadd.f32 %v753_v14, %v2831_v43  ;;  %v1968_v48 = vpop.f32.mrf.mxu0 }
 0x139   : > { %v1942_v34 = vpop.f32.mrf.mxu1 }
 0x13a   : > { %v911_v63 = vpop.f32.mrf.mxu0 }
 0x13b   : > { %v756_v22 = vpop.f32.mrf.mxu1  ;;  %v2880_v1 = vadd.f32 %v911_v63, %v795_v2 }
 0x13c   : > { %v797_v3 = vadd.f32 %v756_v22, %v2843_v54  ;;  %v1969_v40 = vpop.f32.mrf.mxu0 }
 0x13d   : > { %v1943_v19 = vpop.f32.mrf.mxu1 }
 0x13e   : > { %v916_v25 = vpop.f32.mrf.mxu0 }
 0x13f   : > { %v761_v29 = vpop.f32.mrf.mxu1  ;;  %v2883_v20 = vadd.f32 %v916_v25, %v796_v30 }
 0x140   : > { %v798_v5 = vadd.f32 %v761_v29, %v2847_v32  ;;  %v1972_v50 = vpop.f32.mrf.mxu0 }
 0x141   : > { %v1946_v37 = vpop.f32.mrf.mxu1 }
 0x142   : > { %v919_v27 = vpop.f32.mrf.mxu0 }
 0x143   : > { %v764_v43 = vpop.f32.mrf.mxu1  ;;  %v2886_v59 = vadd.f32 %v919_v27, %v797_v3 }
 0x144   : > { %v799_v11 = vadd.f32 %v764_v43, %v2850_v0  ;;  %v1973_v21 = vpop.f32.mrf.mxu0 }
 0x145   : > { %v1947_v23 = vpop.f32.mrf.mxu1 }
 0x146   : > { %v924_v36 = vpop.f32.mrf.mxu0 }
 0x147   : > { %v769_v54 = vpop.f32.mrf.mxu1  ;;  %v2889_v10 = vadd.f32 %v924_v36, %v798_v5 }
 0x148   : > { %v800_v57 = vadd.f32 %v769_v54, %v2853_v12  ;;  %v1976_v24 = vpop.f32.mrf.mxu0 }
 0x149   : > { %v1950_v17 = vpop.f32.mrf.mxu1 }
 0x14a   : > { %v927_v51 = vpop.f32.mrf.mxu0 }
 0x14b   : > { %v772_v32 = vpop.f32.mrf.mxu1  ;;  %v2892_v28 = vadd.f32 %v927_v51, %v799_v11 }
 0x14c   : > { %v801_v15 = vadd.f32 %v772_v32, %v2856_v7  ;;  %v1977_v31 = vpop.f32.mrf.mxu0 }
 0x14d   : > { %v1951_v6 = vpop.f32.mrf.mxu1 }
 0x14e   : > { %v932_v35 = vpop.f32.mrf.mxu0 }
 0x14f   : > { %v777_v0 = vpop.f32.mrf.mxu1  ;;  %v2895_v33 = vadd.f32 %v932_v35, %v800_v57 }
 0x150   : > { %v802_v38 = vadd.f32 %v777_v0, %v2859_v9  ;;  %v1980_v39 = vpop.f32.mrf.mxu0 }
 0x151   : > { %v1954_v41 = vpop.f32.mrf.mxu1 }
 0x152   : > { %v935_v42 = vpop.f32.mrf.mxu0 }
 0x153   : > { %v780_v12 = vpop.f32.mrf.mxu1  ;;  %v2898_v13 = vadd.f32 %v935_v42, %v801_v15 }
 0x154   : > { %v803_v8 = vadd.f32 %v780_v12, %v2862_v44  ;;  %v1981_v47 = vpop.f32.mrf.mxu0 }
 0x155   : > { %v1955_v46 = vpop.f32.mrf.mxu1 }
 0x156   : > { %v940_v60 = vpop.f32.mrf.mxu0 }
 0x157   : > { %v785_v7 = vpop.f32.mrf.mxu1  ;;  %v2901_v45 = vadd.f32 %v940_v60, %v802_v38 }
 0x158   : > { %v804_v56 = vadd.f32 %v785_v7, %v2865_v61  ;;  %v1984_v52 = vpop.f32.mrf.mxu0 }
 0x159   : > { %v1958_v53 = vpop.f32.mrf.mxu1 }
 0x15a   : > { %v943_v62 = vpop.f32.mrf.mxu0 }
 0x15b   : > { %v788_v9 = vpop.f32.mrf.mxu1  ;;  %v2904_v2 = vadd.f32 %v943_v62, %v803_v8 }
 0x15c   : > { %v805_v58 = vadd.f32 %v788_v9, %v2868_v49  ;;  %v1985_v16 = vpop.f32.mrf.mxu0 }
 0x15d   : > { %v1959_v18 = vpop.f32.mrf.mxu1 }
 0x15e   : > { %v948_v14 = vpop.f32.mrf.mxu0 }
 0x15f   : > { %v2907_v44 = vadd.f32 %v948_v14, %v804_v56  ;;  %v1064_v30 = vpop.f32.mrf.mxu1 }
 0x160   : > { %v1988_v48 = vpop.f32.mrf.mxu0 }
 0x161   : > { %v1994_v34 = vpop.f32.mrf.mxu1 }
 0x162   : > { %v951_v63 = vpop.f32.mrf.mxu0 }
 0x163   : > { %v2909_v22 = vadd.f32 %v951_v63, %v805_v58  ;;  %v1067_v61 = vpop.f32.mrf.mxu1 }
 0x164   : > { %v1989_v3 = vpop.f32.mrf.mxu0 }
 0x165   : > { %v1995_v40 = vpop.f32.mrf.mxu1 }
 0x166   : > { %v1199_v19 = vpop.f32.mrf.mxu0 }
 0x167   : > { %v2911_v25 = vpop.f32.mrf.mxu1 }
 0x168   : > { %v2024_v29 = vpop.f32.mrf.mxu0 }
 0x169   : > { %v1998_v5 = vpop.f32.mrf.mxu1 }
 0x16a   : > { %v1202_v49 = vpop.f32.mrf.mxu0 }
 0x16b   : > { %v2913_v50 = vpop.f32.mrf.mxu1 }
 0x16c   : > { %v2025_v37 = vpop.f32.mrf.mxu0 }
 0x16d   : > { %v1999_v27 = vpop.f32.mrf.mxu1 }
 0x16e   : > { %v2915_v43 = vpop.f32.mrf.mxu0  ;;  %v1119_v27 = vadd.f32 %v1064_v30, %v2871_v26  ;;  %v1121_v30 = vadd.f32 %v2911_v25, %v2877_v4 }
 0x16f   : > { %v2917_v11 = vpop.f32.mrf.mxu1 }
 0x170   : > { %v2028_v21 = vpop.f32.mrf.mxu0 }
 0x171   : > { %v2002_v23 = vpop.f32.mrf.mxu1 }
 0x172   : > { %v2919_v36 = vpop.f32.mrf.mxu0 }
 0x173   : > { %v2921_v54 = vpop.f32.mrf.mxu1 }
 0x174   : > { %v2029_v57 = vpop.f32.mrf.mxu0 }
 0x175   : > { %v2003_v24 = vpop.f32.mrf.mxu1  ;;  %v1254_v57 = vadd.f32 %v1199_v19, %v1119_v27 }
 0x176   : > { %v2923_v17 = vpop.f32.mrf.mxu0 }
 0x177   : > { %v2925_v51 = vpop.f32.mrf.mxu1 }
 0x178   : > { %v2032_v32 = vpop.f32.mrf.mxu0 }
 0x179   : > { %v2006_v15 = vpop.f32.mrf.mxu1 }
 0x17a   : > { %v2927_v31 = vpop.f32.mrf.mxu0  ;;  %v1120_v15 = vadd.f32 %v1067_v61, %v2874_v55 }
 0x17b   : > { %v2929_v6 = vpop.f32.mrf.mxu1 }
 0x17c   : > { %v2033_v35 = vpop.f32.mrf.mxu0 }
 0x17d   : > { %v2007_v0 = vpop.f32.mrf.mxu1 }
 0x17e   : > { %v2931_v38 = vpop.f32.mrf.mxu0 }
 0x17f   : > { %v2933_v39 = vpop.f32.mrf.mxu1 }
 0x180   : > { %v2036_v41 = vpop.f32.mrf.mxu0 }
 0x181   : > { %v2010_v42 = vpop.f32.mrf.mxu1 }
 0x182   : > { %v2935_v12 = vpop.f32.mrf.mxu0  ;;  %v2965_v42 = vld [vmem:[%s3055_s2] ss:$0 sm:$0xff] }
 0x183   : > { %v2937_v8 = vpop.f32.mrf.mxu1 }
 0x184   : > { %v2037_v47 = vpop.f32.mrf.mxu0 }
 0x185   : > { %v2011_v46 = vpop.f32.mrf.mxu1  ;;  %v1255_v47 = vadd.f32 %v1202_v49, %v1120_v15  ;;  %v1256_v49 = vadd.f32 %v2915_v43, %v1121_v30  ;;  %v1125_v30 = vadd.f32 %v2925_v51, %v2889_v10 }
 0x186   : > { %v2939_v60 = vpop.f32.mrf.mxu0 }
 0x187   : > { %v2941_v7 = vpop.f32.mrf.mxu1 }
 0x188   : > { %v2040_v56 = vpop.f32.mrf.mxu0 }
 0x189   : > { %v2014_v52 = vpop.f32.mrf.mxu1 }
 0x18a   : > { %v2943_v53 = vpop.f32.mrf.mxu0 }
 0x18b   : > { %v2945_v62 = vpop.f32.mrf.mxu1 }
 0x18c   : > { %v2041_v9 = vpop.f32.mrf.mxu0 }
 0x18d   : > { %v2015_v58 = vpop.f32.mrf.mxu1 }
 0x18e   : > { %v2947_v16 = vpop.f32.mrf.mxu0 }
 0x18f   : > { %v2949_v18 = vpop.f32.mrf.mxu1 }
 0x190   : > { %v2044_v14 = vpop.f32.mrf.mxu0 }
 0x191   : > { %v2018_v48 = vpop.f32.mrf.mxu1 }
 0x192   : > { %v2951_v34 = vpop.f32.mrf.mxu0  ;;  %v1122_v48 = vadd.f32 %v2913_v50, %v2880_v1 }
 0x193   : > { %v2953_v63 = vpop.f32.mrf.mxu1 }
 0x194   : > { %v2045_v3 = vpop.f32.mrf.mxu0 }
 0x195   : > { %v2019_v40 = vpop.f32.mrf.mxu1 }
 0x196   : > { %v2955_v29 = vpop.f32.mrf.mxu0 }
 0x197   : > { %v1363_v5 = vpop.f32.mrf.mxu1 }
 0x198   : > { %v2048_v37 = vpop.f32.mrf.mxu0  ;;  %v1418_v35 = vadd.f32 %v1363_v5, %v1254_v57  ;;  %v1257_v5 = vadd.f32 %v2919_v36, %v1122_v48 }
 0x199   : > { %v2054_v21 = vpop.f32.mrf.mxu1 }
 0x19a   : > { %v2958_v23 = vpop.f32.mrf.mxu0  ;;  %v1123_v21 = vadd.f32 %v2917_v11, %v2883_v20 }
 0x19b   : > { %v1366_v24 = vpop.f32.mrf.mxu1 }
 0x19c   : > { %v2049_v32 = vpop.f32.mrf.mxu0  ;;  %v1419_v61 = vadd.f32 %v1366_v24, %v1255_v47 }
 0x19d   : > { %v2055_v0 = vpop.f32.mrf.mxu1  ;;  %v1258_v32 = vadd.f32 %v2923_v17, %v1123_v21  ;;  %v1128_v21 = vadd.f32 %v2937_v8, %v2898_v13 }
 0x19e   : > { %v1527_v41 = vpop.f32.mrf.mxu0  ;;  %v1124_v0 = vadd.f32 %v2921_v54, %v2886_v59 }
 0x19f   : > { %v1371_v46 = vpop.f32.mrf.mxu1  ;;  %v1582_v26 = vadd.f32 %v1527_v41, %v1418_v35 }
 0x1a0   : > { %v2084_v55 = vpop.f32.mrf.mxu0  ;;  %v1420_v3 = vadd.f32 %v1371_v46, %v1256_v49  ;;  %v1259_v46 = vadd.f32 %v2927_v31, %v1124_v0 }
 0x1a1   : > { %v1603_v19 = vadd.f32 %v2965_v42, %v1582_v26  ;;  %v2058_v56 = vpop.f32.mrf.mxu1 }
 0x1a2   : > { %v1530_v52 = vpop.f32.mrf.mxu0  ;;  %v1260_v56 = vadd.f32 %v2931_v38, %v1125_v30  ;;  %v1131_v30 = vadd.f32 %v2949_v18, %v2907_v44 }
 0x1a3   : > { %1618 = vst.msk [vmem:[%s2970_s17] sm:$0xff] %vm1617_vm9, %v1603_v19  ;;  %v1374_v9 = vpop.f32.mrf.mxu1  ;;  %v1583_v58 = vadd.f32 %v1530_v52, %v1419_v61 }
 0x1a4   : > { %v2085_v14 = vpop.f32.mrf.mxu0  ;;  %v1421_v57 = vadd.f32 %v1374_v9, %v1257_v5  ;;  %v1126_v9 = vadd.f32 %v2929_v6, %v2892_v28 }
 0x1a5   : > { %v1604_v4 = vadd.f32 %v2965_v42, %v1583_v58  ;;  %v2059_v25 = vpop.f32.mrf.mxu1 }
 0x1a6   : > { %v1535_v40 = vpop.f32.mrf.mxu0  ;;  %v1261_v48 = vadd.f32 %v2935_v12, %v1126_v9  ;;  %v1127_v25 = vadd.f32 %v2933_v39, %v2895_v33 }
 0x1a7   : > { %1619 = vst.msk [vmem:[%s2970_s17 + $0x8] sm:$0xff] %vm1617_vm9, %v1604_v4  ;;  %v1379_v37 = vpop.f32.mrf.mxu1  ;;  %v1584_v43 = vadd.f32 %v1535_v40, %v1420_v3 }
 0x1a8   : > { %v2088_v27 = vpop.f32.mrf.mxu0  ;;  %v1422_v41 = vadd.f32 %v1379_v37, %v1258_v32  ;;  %v1262_v37 = vadd.f32 %v2939_v60, %v1127_v25 }
 0x1a9   : > { %v1605_v1 = vadd.f32 %v2965_v42, %v1584_v43  ;;  %v2062_v50 = vpop.f32.mrf.mxu1 }
 0x1aa   : > { %v1538_v24 = vpop.f32.mrf.mxu0  ;;  %v1263_v50 = vadd.f32 %v2943_v53, %v1128_v21 }
 0x1ab   : > { %1620 = vst.msk [vmem:[%s2970_s17 + $0x10] sm:$0xff] %vm1617_vm9, %v1605_v1  ;;  %v1382_v15 = vpop.f32.mrf.mxu1  ;;  %v1585_v36 = vadd.f32 %v1538_v24, %v1421_v57 }
 0x1ac   : > { %v2089_v35 = vpop.f32.mrf.mxu0  ;;  %v1423_v61 = vadd.f32 %v1382_v15, %v1259_v46  ;;  %v1129_v15 = vadd.f32 %v2941_v7, %v2901_v45 }
 0x1ad   : > { %v1606_v20 = vadd.f32 %v2965_v42, %v1585_v36  ;;  %v2063_v11 = vpop.f32.mrf.mxu1 }
 0x1ae   : > { %v1543_v47 = vpop.f32.mrf.mxu0  ;;  %v1264_v0 = vadd.f32 %v2947_v16, %v1129_v15  ;;  %v1130_v11 = vadd.f32 %v2945_v62, %v2904_v2 }
 0x1af   : > { %1621 = vst.msk [vmem:[%s2970_s17 + $0x18] sm:$0xff] %vm1617_vm9, %v1606_v20  ;;  %v1387_v26 = vpop.f32.mrf.mxu1  ;;  %v1586_v17 = vadd.f32 %v1543_v47, %v1422_v41 }
 0x1b0   : > { %v2092_v55 = vpop.f32.mrf.mxu0  ;;  %v1424_v58 = vadd.f32 %v1387_v26, %v1260_v56  ;;  %v1265_v26 = vadd.f32 %v2951_v34, %v1130_v11 }
 0x1b1   : > { %v1607_v59 = vadd.f32 %v2965_v42, %v1586_v17  ;;  %v2066_v54 = vpop.f32.mrf.mxu1 }
 0x1b2   : > { %v1546_v19 = vpop.f32.mrf.mxu0  ;;  %v1266_v54 = vadd.f32 %v2955_v29, %v1131_v30 }
 0x1b3   : > { %1622 = vst.msk [vmem:[%s2970_s17 + $0x20] sm:$0xff] %vm1617_vm9, %v1607_v59  ;;  %v1390_v52 = vpop.f32.mrf.mxu1  ;;  %v1587_v31 = vadd.f32 %v1546_v19, %v1423_v61 }
 0x1b4   : > { %v2093_v49 = vpop.f32.mrf.mxu0  ;;  %v1425_v40 = vadd.f32 %v1390_v52, %v1261_v48  ;;  %v1132_v52 = vadd.f32 %v2953_v63, %v2909_v22 }
 0x1b5   : > { %v1608_v10 = vadd.f32 %v2965_v42, %v1587_v31  ;;  %v2067_v51 = vpop.f32.mrf.mxu1 }
 0x1b6   : > { %v1551_v14 = vpop.f32.mrf.mxu0  ;;  %v1267_v9 = vadd.f32 %v2958_v23, %v1132_v52 }
 0x1b7   : > { %1623 = vst.msk [vmem:[%s2970_s17 + $0x28] sm:$0xff] %vm1617_vm9, %v1608_v10  ;;  %v1395_v3 = vpop.f32.mrf.mxu1  ;;  %v1588_v38 = vadd.f32 %v1551_v14, %v1424_v58 }
 0x1b8   : > { %v2096_v4 = vpop.f32.mrf.mxu0  ;;  %v1426_v57 = vadd.f32 %v1395_v3, %v1262_v37 }
 0x1b9   : > { %v1609_v28 = vadd.f32 %v2965_v42, %v1588_v38  ;;  %v2070_v6 = vpop.f32.mrf.mxu1 }
 0x1ba   : > { %v1554_v5 = vpop.f32.mrf.mxu0 }
 0x1bb   : > { %1624 = vst.msk [vmem:[%s2970_s17 + $0x30] sm:$0xff] %vm1617_vm9, %v1609_v28  ;;  %v1398_v43 = vpop.f32.mrf.mxu1  ;;  %v1589_v12 = vadd.f32 %v1554_v5, %v1425_v40 }
 0x1bc   : > { %v2097_v27 = vpop.f32.mrf.mxu0  ;;  %v1427_v36 = vadd.f32 %v1398_v43, %v1263_v50 }
 0x1bd   : > { %v1610_v33 = vadd.f32 %v2965_v42, %v1589_v12  ;;  %v2071_v39 = vpop.f32.mrf.mxu1 }
 0x1be   : > { %v1559_v1 = vpop.f32.mrf.mxu0 }
 0x1bf   : > { %1625 = vst.msk [vmem:[%s2970_s17 + $0x38] sm:$0xff] %vm1617_vm9, %v1610_v33  ;;  %v1403_v24 = vpop.f32.mrf.mxu1  ;;  %v1590_v60 = vadd.f32 %v1559_v1, %v1426_v57 }
 0x1c0   : > { %v2100_v32 = vpop.f32.mrf.mxu0  ;;  %v1428_v47 = vadd.f32 %v1403_v24, %v1264_v0 }
 0x1c1   : > { %v1611_v13 = vadd.f32 %v2965_v42, %v1590_v60  ;;  %v2074_v8 = vpop.f32.mrf.mxu1 }
 0x1c2   : > { %v1562_v35 = vpop.f32.mrf.mxu0 }
 0x1c3   : > { %1626 = vst.msk [vmem:[%s2970_s17 + $0x40] sm:$0xff] %vm1617_vm9, %v1611_v13  ;;  %v1406_v41 = vpop.f32.mrf.mxu1  ;;  %v1591_v53 = vadd.f32 %v1562_v35, %v1427_v36 }
 0x1c4   : > { %v2101_v20 = vpop.f32.mrf.mxu0  ;;  %v1429_v61 = vadd.f32 %v1406_v41, %v1265_v26 }
 0x1c5   : > { %v1612_v45 = vadd.f32 %v2965_v42, %v1591_v53  ;;  %v2075_v7 = vpop.f32.mrf.mxu1 }
 0x1c6   : > { %v1567_v46 = vpop.f32.mrf.mxu0 }
 0x1c7   : > { %1627 = vst.msk [vmem:[%s2970_s17 + $0x48] sm:$0xff] %vm1617_vm9, %v1612_v45  ;;  %v1411_v17 = vpop.f32.mrf.mxu1  ;;  %v1592_v16 = vadd.f32 %v1567_v46, %v1428_v47 }
 0x1c8   : > { %v2104_v55 = vpop.f32.mrf.mxu0  ;;  %v1430_v31 = vadd.f32 %v1411_v17, %v1266_v54 }
 0x1c9   : > { %v1613_v2 = vadd.f32 %v2965_v42, %v1592_v16  ;;  %v2078_v62 = vpop.f32.mrf.mxu1 }
 0x1ca   : > { %v1570_v59 = vpop.f32.mrf.mxu0 }
 0x1cb   : > { %1628 = vst.msk [vmem:[%s2970_s17 + $0x50] sm:$0xff] %vm1617_vm9, %v1613_v2  ;;  %v1414_v34 = vpop.f32.mrf.mxu1  ;;  %v1593_v19 = vadd.f32 %v1570_v59, %v1429_v61 }
 0x1cc   : > { %v2105_v56 = vpop.f32.mrf.mxu0  ;;  %v1431_v10 = vadd.f32 %v1414_v34, %v1267_v9 }
 0x1cd   : > { %v1614_v44 = vadd.f32 %v2965_v42, %v1593_v19  ;;  %v2079_v18 = vpop.f32.mrf.mxu1 }
 0x1ce   : > { %v1575_v49 = vpop.f32.mrf.mxu0 }
 0x1cf   : > { %1629 = vst.msk [vmem:[%s2970_s17 + $0x58] sm:$0xff] %vm1617_vm9, %v1614_v44  ;;  %v1594_v29 = vadd.f32 %v1575_v49, %v1430_v31 }
 0x1d0   : > { %v2108_v58 = vpop.f32.mrf.mxu0 }
 0x1d1   : > { %v1615_v51 = vadd.f32 %v2965_v42, %v1594_v29 }
 0x1d2   : > { %v1578_v14 = vpop.f32.mrf.mxu0 }
 0x1d3   : > { %1630 = vst.msk [vmem:[%s2970_s17 + $0x60] sm:$0xff] %vm1617_vm9, %v1615_v51  ;;  %v1595_v48 = vadd.f32 %v1578_v14, %v1431_v10 }
 0x1d4   : > { %v2109_v22 = vpop.f32.mrf.mxu0 }
 0x1d5   : > { %v1616_v63 = vadd.f32 %v2965_v42, %v1595_v48 }
 0x1d7   : > { %1631 = vst.msk [vmem:[%s2970_s17 + $0x68] sm:$0xff] %vm1617_vm9, %v1616_v63 }
 0x1d8 PF: > { %s13_s12 = sadd.s32 1, %s2142_s12  }
 0x1d9   : > { %p10_p4 = scmp.ge.s32.totalorder %s13_s12, 4  }
 0x1db   :  { %12 = sbr.rel (!%p10_p4) target bundleno = 1 (0x1), region = 62 }

</bundles_post_ra>
